<compile_context>
chip_gen: v7x
topology: tpu7x:2x2x1
jax: 0.10.0
libtpu: 0.0.40
codegen_flags: <defaults>
</compile_context>

<pallas_src>
import jax
import jax.numpy as jnp
from jax.experimental import pallas as pl
from jax.experimental.pallas import tpu as pltpu

IN_FEATURES = 100
OUT_FEATURES = 3 * 64 * 64      # 12288
TILE_N = 6144                   # 2 grid steps: even split for v7x dual-TC


def fc_kernel(x_ref, w_ref, b_ref, o_ref):
    # x_ref : (B, 100)          full batch, f32
    # w_ref : (100, TILE_N)     one output tile of the (K, N) bf16 weight
    # b_ref : (1, TILE_N)       f32
    # o_ref : (B, TILE_N)       f32
    x_bf = x_ref[...].astype(jnp.bfloat16)
    acc = jnp.dot(x_bf, w_ref[...], preferred_element_type=jnp.float32)
    o_ref[...] = acc + b_ref[...]


def prepare_params(weight, bias):
    """One-time (outside the hot path) parameter prep.

    weight: (12288, 100) PyTorch layout, f32; bias: (12288,) f32.
    Returns the transposed bf16 weight (100, 12288) and lane-dense f32 bias
    (1, 12288).
    """
    w_t = jnp.asarray(weight).T.astype(jnp.bfloat16)        # (K, N)
    b2 = jnp.asarray(bias).reshape(1, OUT_FEATURES).astype(jnp.float32)
    return w_t, b2


def dummy_generator_forward(x, weight_t_bf16, bias_2d):
    """x: (B, 100) f32; weight_t_bf16: (100, 12288) bf16; bias_2d: (1, 12288) f32."""
    B = x.shape[0]
    grid = (OUT_FEATURES // TILE_N,)   # 2 steps

    cost = pl.CostEstimate(
        flops=2 * B * IN_FEATURES * OUT_FEATURES,
        transcendentals=0,
        bytes_accessed=(
            weight_t_bf16.size * 2          # bf16 weight read
            + bias_2d.size * 4              # f32 bias read
            + x.size * 4                    # f32 activation read
            + B * OUT_FEATURES * 4          # f32 output write
        ),
    )

    out = pl.pallas_call(
        fc_kernel,
        out_shape=jax.ShapeDtypeStruct((B, OUT_FEATURES), jnp.float32),
        grid_spec=pltpu.PrefetchScalarGridSpec(
            num_scalar_prefetch=0,
            grid=grid,
            in_specs=[
                pl.BlockSpec((B, IN_FEATURES), lambda j: (0, 0)),
                pl.BlockSpec((IN_FEATURES, TILE_N), lambda j: (0, j)),
                pl.BlockSpec((1, TILE_N), lambda j: (0, j)),
            ],
            out_specs=pl.BlockSpec((B, TILE_N), lambda j: (0, j)),
        ),
        compiler_params=pltpu.CompilerParams(
            dimension_semantics=("parallel",),
        ),
        cost_estimate=cost,
    )(x, weight_t_bf16, bias_2d)

    # PyTorch: .view(-1, 3, 64, 64)  -> NCHW
    return out.reshape(-1, 3, 64, 64)


def init_params(key):
    """Deterministic params matching nn.Linear(100, 12288) default init."""
    kw, kb = jax.random.split(key)
    bound = 1.0 / jnp.sqrt(jnp.float32(IN_FEATURES))
    weight = jax.random.uniform(
        kw, (OUT_FEATURES, IN_FEATURES), jnp.float32, -bound, bound)
    bias = jax.random.uniform(
        kb, (OUT_FEATURES,), jnp.float32, -bound, bound)
    return weight, bias


if __name__ == "__main__":
    key = jax.random.PRNGKey(0)
    k_x, k_p = jax.random.split(key)

    B = 2
    x = jax.random.normal(k_x, (B, IN_FEATURES), jnp.float32)
    weight, bias = init_params(k_p)

    # One-time parameter prep (transpose + bf16 cast + bias reshape),
    # outside the hot path.
    w_t, b2 = prepare_params(weight, bias)
    w_t, b2 = jax.block_until_ready((w_t, b2))

    y = dummy_generator_forward(x, w_t, b2)
    y = jax.block_until_ready(y)
    assert y.shape == (B, 3, 64, 64), y.shape

    # Exact-structure reference: same bf16 weight, f32 accumulate.
    ref_bf16 = (
        jnp.dot(x.astype(jnp.bfloat16), w_t, preferred_element_type=jnp.float32)
        + b2
    ).reshape(-1, 3, 64, 64)
    assert jnp.allclose(y, ref_bf16, atol=1e-5, rtol=1e-5)

    # Loose check against the original f32 PyTorch-equivalent math
    # (bf16 weight quantization error only).
    ref_f32 = (x @ weight.T + bias).reshape(-1, 3, 64, 64)
    assert jnp.allclose(y, ref_f32, atol=3e-2, rtol=3e-2)

    print("KERNEL_OK")
</pallas_src>

<mosaic_0001>
module attributes {stable_mosaic.version = 11 : i64} {
  func.func @fc_kernel(%arg0: i32, %arg1: memref<2x100xf32, #tpu.memory_space<vmem>>, %arg2: memref<100x6144xbf16, #tpu.memory_space<vmem>>, %arg3: memref<1x6144xf32, #tpu.memory_space<vmem>>, %arg4: memref<2x6144xf32, #tpu.memory_space<vmem>>) attributes {dimension_semantics = [#tpu.dimension_semantics<parallel>], iteration_bounds = array<i64: 2>, scalar_prefetch = 0 : i64, scratch_operands = 0 : i64, tpu.core_type = #tpu.core_type<tc>, window_params = [{pipeline_mode = #tpu.pipeline_mode<synchronous>, transform_indices = @transform_0, window_bounds = array<i64: 2, 100>}, {transform_indices = @transform_1, window_bounds = array<i64: 100, 6144>}, {transform_indices = @transform_2, window_bounds = array<i64: 1, 6144>}, {transform_indices = @transform_3, window_bounds = array<i64: 2, 6144>}]} {
    %c0 = arith.constant 0 : index
    %c0_0 = arith.constant 0 : index
    %0 = vector.load %arg1[%c0, %c0_0] : memref<2x100xf32, #tpu.memory_space<vmem>>, vector<2x100xf32>
    %1 = arith.truncf %0 : vector<2x100xf32> to vector<2x100xbf16>
    %c0_1 = arith.constant 0 : index
    %c0_2 = arith.constant 0 : index
    %2 = vector.load %arg2[%c0_1, %c0_2] : memref<100x6144xbf16, #tpu.memory_space<vmem>>, vector<100x6144xbf16>
    %cst = arith.constant dense<0.000000e+00> : vector<2x6144xf32>
    %3 = tpu.matmul %1, %2, %cst {dimension_numbers = #tpu.dot_dimension_numbers<[1], [0], [0], [1], [0, 0, 1, 1], [], []>} : vector<2x100xbf16>, vector<100x6144xbf16>, vector<2x6144xf32> -> vector<2x6144xf32>
    %c0_3 = arith.constant 0 : index
    %c0_4 = arith.constant 0 : index
    %4 = vector.load %arg3[%c0_3, %c0_4] : memref<1x6144xf32, #tpu.memory_space<vmem>>, vector<1x6144xf32>
    %5 = vector.broadcast %4 : vector<1x6144xf32> to vector<2x6144xf32>
    %6 = arith.addf %3, %5 : vector<2x6144xf32>
    %c0_5 = arith.constant 0 : index
    %c0_6 = arith.constant 0 : index
    %7 = vector.load %arg4[%c0_5, %c0_6] : memref<2x6144xf32, #tpu.memory_space<vmem>>, vector<2x6144xf32>
    tpu.vector_store %arg4[%c0_5, %c0_6], %6 {strides = array<i32>} : memref<2x6144xf32, #tpu.memory_space<vmem>>, vector<2x6144xf32>,
    return
  }
  func.func @transform_0(%arg0: i32) -> (i32, i32) {
    %c0_i32 = arith.constant 0 : i32
    %c0_i32_0 = arith.constant 0 : i32
    %c0_i32_1 = arith.constant 0 : i32
    return %c0_i32, %c0_i32_0 : i32, i32
  }
  func.func @transform_1(%arg0: i32) -> (i32, i32) {
    %c0_i32 = arith.constant 0 : i32
    %c0_i32_0 = arith.constant 0 : i32
    return %c0_i32, %arg0 : i32, i32
  }
  func.func @transform_2(%arg0: i32) -> (i32, i32) {
    %c0_i32 = arith.constant 0 : i32
    %c0_i32_0 = arith.constant 0 : i32
    return %c0_i32, %arg0 : i32, i32
  }
  func.func @transform_3(%arg0: i32) -> (i32, i32) {
    %c0_i32 = arith.constant 0 : i32
    %c0_i32_0 = arith.constant 0 : i32
    return %c0_i32, %arg0 : i32, i32
  }
}

</mosaic_0001>

<bundles_post_ra>
// kernel: tpu_custom_call.1
= control target key start
LH: loop header
LB: loop body
LE: loop exit
PB: predicated region body
PF: predicated region fallthrough
CT: control target
= control target key end

     0   :  { %8 = vsyncpa [#allocation3], 0  ;;  %s5415_s0 = inlined_call_operand.hbm [shape: f32[2,100], index: 0, kind: input, shape index: {}]   ;;  %s5416_s1 = inlined_call_operand.hbm [shape: bf16[100,12288], index: 1, kind: input, shape index: {}]   ;;  %s5417_s2 = inlined_call_operand.hbm [shape: f32[1,12288], index: 2, kind: input, shape index: {}]   ;;  %s5418_s3 = inlined_call_operand.hbm [shape: f32[2,12288], index: 3, kind: output, shape index: {}]  }
   0x1   :  { %9 = vsyncpa [#allocation6], 0 }
   0x2   :  { %11 = vsyncpa [#allocation6 + $0x1], 0 }
   0x3   :  { %12 = vsyncpa [#allocation4], 0 }
   0x4   :  { %14 = vsyncpa [#allocation4 + $0x1], 0  ;;  %s4600_s12 = smov 0   ;;  %s4602_s13 = smov 0  }
   0x5   :  { %s4604_s14 = smov 0   ;;  %s4606_s15 = smov 0  }
   0x6 LB: > { %s4621_s16 = sadd.s32 1, %s4569_s15   ;;  %s48_s17 = sadd.s32 1, %s4565_s14  ;;  %s4569_s15 = sphi %s4606_s15, %s5445_s15   ;;  %s4565_s14 = sphi %s4604_s14, %s5444_s14   ;;  %s4561_s13 = sphi %s4602_s13, %s5443_s13   ;;  %s4557_s12 = sphi %s4600_s12, %s5442_s12  }
   0x7   : > { %s45_s18 = ssub.s32 %s4569_s15, %s4621_s16  ;;  %p55_p0 = scmp.ne.s32.totalorder %s4565_s14, %s4561_s13 }
   0x8   : > { %p46_p1 = scmp.eq.s32.totalorder %s45_s18, 0  ;;  %p56_p2 = scmp.eq.s32.totalorder %s4569_s15, 0 }
   0x9   : > { %p4322_p4 = scmp.lt.s32.totalorder %s4569_s15, 2  ;;  %s148_s20 = sand.u32 1, %s4569_s15  }
   0xa   : > { %s4632_s19 = scalar_select %p46_p1, %s4565_s14, %s48_s17  }
   0xb   : > { %p57_p5 = por %p56_p2, %p55_p0  ;;  %s150_s21 = sand.u32 1, %s4565_s14  }
   0xc   : > { %s4291_s22 = smul.u32 2496, %s150_s21  ;;  %s4653_s30 = scalar_lea.sflag [#allocation6], %s148_s20 }
   0xd   : > { %p4641_p6 = pnand %p4322_p4, %p57_p5  ;;  %s4288_s24 = smul.u32 3072, %s4569_s15 }
   0xe   : > { %s152_s28 = scalar_lea.vmem [#allocation5], %s4291_s22  ;;  %s4416_s7 = scalar_lea.hbm %s5416_s1, 79872 }
   0xf   : > { %s5426_s23 = scalar_select %p4641_p6, 1, 0 }
  0x10   : > { %s4649_s27 = scalar_lea.hbm %s5416_s1, %s4288_s24  ;;  %s159_s29 = sshll.u32 %s152_s28, 4  ;;  %s4651_s29 = int_to_ptr.vmem [resolvable:$true] %s159_s29 }
  0x11   : > { %s4411_s4 = scalar_lea.hbm %s4649_s27, 39936  ;;  %p5420_p8 = pneg %p4641_p6 }
  0x12   : > { %p4412_p7 = scmp.ne.s32.totalorder %s4649_s27, %s4411_s4  ;;  %p4417_p11 = scmp.lt.u32.totalorder %s4649_s27, %s5416_s1 }
  0x13   : > { %p4418_p12 = scmp.lt.u32.totalorder %s4416_s7, %s4411_s4  ;;  %p4420_p1 = scmp.lt.u32.totalorder %s4411_s4, %s4649_s27 }
  0x14   : > { %p4414_p9 = pnand %p5420_p8, %p4412_p7 }
  0x15   : > { %p4419_p13 = por %p4418_p12, %p4417_p11 }
  0x16   : > { %p4415_p10 = pneg %p4414_p9 }
  0x17   : > { %p4421_p2 = por %p4420_p1, %p4419_p13 }
  0x19   : > { %p4422_p4 = pnand %p4421_p2, %p4415_p10 }
  0x1b   : > { %4425 = shalt.err (!%p4422_p4)
}
  0x1c   : > { %s4426_s10 = scalar_lea.vmem %s4651_s29, 39936  ;;  %s4571_s11 = smov [#allocation5]  }
  0x1d   : > { %p4427_p5 = scmp.ne.s32.totalorder %s4651_s29, %s4426_s10  ;;  %s4431_s17 = sshll.u32 %s4571_s11, 4  ;;  %s4432_s17 = int_to_ptr.vmem [resolvable:$false] %s4431_s17 }
  0x1e   : > { %s4433_s18 = scalar_lea.vmem %s4432_s17, 79872  ;;  %p4434_p3 = scmp.lt.s32.totalorder %s4651_s29, %s4432_s17 }
  0x1f   : > { %p4429_p7 = pnand %p4427_p5, %p5420_p8  ;;  %p4435_p11 = scmp.lt.s32.totalorder %s4433_s18, %s4426_s10 }
  0x21   : > { %p4430_p9 = pneg %p4429_p7  ;;  %p4436_p12 = por %p4435_p11, %p4434_p3 }
  0x23   : > { %p4437_p13 = pnand %p4436_p12, %p4430_p9 }
  0x25   : > { %4440 = shalt.err (!%p4437_p13)
}
  0x26   : > { %s4572_s20 = smov 6144   ;;  %s4573_s22 = smov 3072  }
  0x27   : > { %s4574_s24 = smov 192   ;;  %s4682_s25 = sadd.s32 4294967295, %s4569_s15  }
  0x28   : > { %4313 = dma.hbm_to_vmem [thread:$0]  (!%p4641_p6), %s4649_s27, 39936, %s4651_s29, %s4653_s30, %s4572_s20, %s4573_s22, %s4574_s24  }
  0x29   : > { %s3893_s26 = sadd.s32 4294967294, %s4569_s15   ;;  %p61_p3 = scmp.ne.s32.totalorder %s4561_s13, %s4557_s12 }
  0x2a   : > { %p5419_p10 = scmp.eq.s32.totalorder %s4682_s25, 0  ;;  %p111_p1 = scmp.eq.s32.totalorder %s4682_s25, 1 }
  0x2b   : > { %p117_p2 = scmp.eq.s32.totalorder %s3893_s26, 1  ;;  %p3894_p4 = scmp.ge.s32.totalorder %s4569_s15, 1 }
  0x2c   : > { %p4692_p5 = por %p5419_p10, %p61_p3  ;;  %p4699_p7 = por %p111_p1, %p55_p0 }
  0x2d   : > { %p4703_p9 = por %p117_p2, %p61_p3  ;;  %p124_p11 = scmp.lt.s32.totalorder %s4569_s15, 3 }
  0x2e   : > { %s5427_s28 = scalar_select %p4692_p5, 1, 0 }
  0x2f   : > { %s5428_s27 = scalar_select %p4699_p7, 1, 0 }
  0x30   : > { %s5429_s29 = scalar_select %p4703_p9, 1, 0 }
  0x31   : > { %p4708_p12 = pnand %p3894_p4, %p124_p11  ;;  %s4575_s5 = smov [#allocation2]  }
  0x32   : > { %s137_s6 = sshll.u32 %s4575_s5, 4  ;;  %s4292_s7 = smul.u32 48, %s150_s21  ;;  %s138_s6 = int_to_ptr.vmem [resolvable:$true] %s137_s6 }
  0x33   : > { %s5430_s4 = scalar_select %p4708_p12, 1, 0 }
  0x34   : > { %p4306_p13 = pneg %p4708_p12  ;;  %s4289_s8 = smul.u32 768, %s4569_s15 }
  0x35   : > { %s173_s18 = scalar_lea.vmem [#allocation7], %s4292_s7  ;;  %s4441_s24 = scalar_lea.hbm %s5415_s0, 32 }
  0x36   : > { %p4719_p0 = pnand %p4306_p13, %p5419_p10  ;;  %s4726_s17 = scalar_lea.hbm %s5417_s2, %s4289_s8 }
  0x37   : > { %s181_s20 = sshll.u32 %s173_s18, 4  ;;  %p4442_p3 = scmp.ne.s32.totalorder %s5415_s0, %s4441_s24  ;;  %s4728_s20 = int_to_ptr.vmem [resolvable:$true] %s181_s20 }
  0x38   : > { %p4443_p1 = pneg %p4719_p0  ;;  %p4448_p11 = scmp.lt.u32.totalorder %s4441_s24, %s5415_s0 }
  0x3a   : > { %p4444_p2 = pnand %p4443_p1, %p4442_p3 }
  0x3c   : > { %p4445_p4 = pneg %p4444_p2 }
  0x3e   : > { %p4450_p13 = pnand %p4448_p11, %p4445_p4 }
  0x40   : > { %4453 = shalt.err (!%p4450_p13)
}
  0x41   : > { %s4454_s7 = scalar_lea.vmem %s138_s6, 32  ;;  %p4462_p7 = scmp.lt.s32.totalorder %s138_s6, %s138_s6 }
  0x42   : > { %p4455_p10 = scmp.ne.s32.totalorder %s138_s6, %s4454_s7  ;;  %p4463_p5 = scmp.lt.s32.totalorder %s4454_s7, %s4454_s7 }
  0x44   : > { %p4457_p8 = pnand %p4455_p10, %p4443_p1  ;;  %p4464_p12 = por %p4463_p5, %p4462_p7 }
  0x46   : > { %p4458_p9 = pneg %p4457_p8 }
  0x48   : > { %p4465_p6 = pnand %p4464_p12, %p4458_p9 }
  0x4a   : > { %4468 = shalt.err (!%p4465_p6)
}
  0x4b   : > { %4309 = dma.hbm_to_vmem [thread:$0]  (!%p4719_p0), %s5415_s0, 32, %s138_s6, [#allocation3]  }
  0x4c   : > { %s4469_s21 = scalar_lea.hbm %s4726_s17, 768  ;;  %p5432_p10 = scmp.ne.s32.totalorder %s5426_s23, 0 }
  0x4d   : > { %p4470_p3 = scmp.ne.s32.totalorder %s4726_s17, %s4469_s21  ;;  %s4474_s26 = scalar_lea.hbm %s5417_s2, 1536 }
  0x4e   : > { %p5433_p8 = pneg %p5432_p10  ;;  %p4475_p6 = scmp.lt.u32.totalorder %s4726_s17, %s5417_s2 }
  0x4f   : > { %p4476_p5 = scmp.lt.u32.totalorder %s4474_s26, %s4469_s21  ;;  %p4478_p9 = scmp.lt.u32.totalorder %s4469_s21, %s4726_s17 }
  0x50   : > { %p4472_p1 = pnand %p4470_p3, %p5433_p8 }
  0x51   : > { %p4477_p7 = por %p4476_p5, %p4475_p6 }
  0x52   : > { %p4473_p2 = pneg %p4472_p1 }
  0x53   : > { %p4479_p12 = por %p4478_p9, %p4477_p7 }
  0x55   : > { %p4480_p4 = pnand %p4479_p12, %p4473_p2 }
  0x57   : > { %4483 = shalt.err (!%p4480_p4)
}
  0x58   : > { %s4484_s6 = scalar_lea.vmem %s4728_s20, 768  ;;  %p5434_p11 = pmov %p5433_p8 }
  0x59   : > { %p4485_p0 = scmp.ne.s32.totalorder %s4728_s20, %s4484_s6  ;;  %s4576_s10 = smov [#allocation7]  }
  0x5a   : > { %s4489_s11 = sshll.u32 %s4576_s10, 4  ;;  %s4490_s11 = int_to_ptr.vmem [resolvable:$false] %s4489_s11 }
  0x5b   : > { %p4487_p13 = pnand %p4485_p0, %p5434_p11  ;;  %s4491_s7 = scalar_lea.vmem %s4490_s11, 1536 }
  0x5c   : > { %p4492_p8 = scmp.lt.s32.totalorder %s4728_s20, %s4490_s11  ;;  %p4493_p1 = scmp.lt.s32.totalorder %s4491_s7, %s4484_s6 }
  0x5d   : > { %p4488_p3 = pneg %p4487_p13 }
  0x5e   : > { %p4494_p6 = por %p4493_p1, %p4492_p8 }
  0x60   : > { %p4495_p5 = pnand %p4494_p6, %p4488_p3 }
  0x62   : > { %4498 = shalt.err (!%p4495_p5)
}
  0x63   : > { %4316 = dma.hbm_to_vmem [thread:$0]  (!%p5432_p10), %s4726_s17, 768, %s4728_s20, %s4653_s30  }
  0x64   : > { %p5435_p2 = scmp.ne.s32.totalorder %s5430_s4, 0 }
  0x65   : > { %p5436_p7 = scmp.eq.s32.totalorder (!%p5435_p2), %s4682_s25, 0 }
  0x66   : > { %190 = sbr.rel (%p5435_p2) target bundleno = 690 (0x2b2), region = 32 }
  0x6d   : > { %4544 = dma.done.wait (%p5436_p7), [#allocation3], 32   ;;  %p5437_p9 = pmov %p5436_p7 }
  0x6e   : > { %s196_s8 = sand.u32 1, %s4682_s25   ;;  %s4778_s18 = sand.u32 1, %s4561_s13  }
  0x6f   : > { %4546 = vsyncadd (%p5437_p9), [#allocation3], 4294967264  ;;  %s4293_s23 = smul.u32 2496, %s4778_s18  ;;  %s197_s21 = scalar_lea.sflag [#allocation6], %s196_s8 }
  0x70   : > { %p5438_p10 = scmp.ne.s32.totalorder %s5427_s28, 0 }
  0x71   : > { %s4781_s22 = scalar_lea.vmem [#allocation5], %s4293_s23 }
  0x72   : > { %4548 = dma.done.wait (%p5438_p10), %s197_s21, 40704  }
  0x73   : > { %4550 = vsyncadd (%p5438_p10), %s197_s21, 4294926592  ;;  %v4577_v0 = vmov 0   ;;  %v243_v1 = vld [vmem:[%s4781_s22] sm:$0xff]  ;;  %v244_v3 = vld [vmem:[%s4781_s22 + $0x8] sm:$0xff]  ;;  %vm2371_vm0 = vcmask 1041408   ;;  %vm2367_vm1 = vcmask 818176  }
  0x74   : > { %2548 = vmatprep.mubr.bf16.mxu0 %v4577_v0  ;;  %2589 = vmatprep.mubr.bf16.mxu1 %v4577_v0  ;;  %v267_v2 = vld [vmem:[%s4781_s22 + $0xc0] sm:$0xff]  ;;  %v268_v5 = vld [vmem:[%s4781_s22 + $0xc8] sm:$0xff]  ;;  %v245_v55 = vld [vmem:[%s4781_s22 + $0x10] sm:$0xff]  ;;  %s4294_s30 = smul.u32 48, %s4778_s18  ;;  %s3777_s6 = scalar_lea.sflag [#allocation4], %s4778_s18 }
  0x75   : > { %v3902_v4 = vcombine.high %v243_v1, %v267_v2  ;;  %v3901_v6 = vcombine.low %v243_v1, %v267_v2  ;;  %v291_v7 = vld [vmem:[%s4781_s22 + $0x180] sm:$0xff]  ;;  %v3904_v9 = vcombine.high %v244_v3, %v268_v5  ;;  %v3903_v10 = vcombine.low %v244_v3, %v268_v5  ;;  %v292_v12 = vld [vmem:[%s4781_s22 + $0x188] sm:$0xff]  ;;  %v269_v56 = vld [vmem:[%s4781_s22 + $0xd0] sm:$0xff]  ;;  %s4295_s4 = smul.u32 96, %s4778_s18  ;;  %p5439_p4 = scmp.ne.s32.totalorder %s5428_s27, 0 }
  0x76   : > { %v315_v8 = vld [vmem:[%s4781_s22 + $0x240] sm:$0xff]  ;;  %v316_v13 = vld [vmem:[%s4781_s22 + $0x248] sm:$0xff]  ;;  %v246_v57 = vld [vmem:[%s4781_s22 + $0x18] sm:$0xff]  ;;  %v3906_v61 = vcombine.high %v245_v55, %v269_v56  ;;  %s5105_s28 = scalar_lea.vmem [#allocation7], %s4294_s30  ;;  %s4290_s20 = smul.u32 1536, %s4682_s25 }
  0x77   : > { %v3950_v11 = vcombine.high %v291_v7, %v315_v8  ;;  %v339_v14 = vld [vmem:[%s4781_s22 + $0x300] sm:$0xff]  ;;  %2516 = vmatprep.subr.bf16.mxu0 %v3902_v4  ;;  %v3952_v15 = vcombine.high %v292_v12, %v316_v13  ;;  %v340_v17 = vld [vmem:[%s4781_s22 + $0x308] sm:$0xff]  ;;  %2557 = vmatprep.subr.bf16.mxu1 %v3904_v9  ;;  %v3949_v19 = vcombine.low %v291_v7, %v315_v8  ;;  %v270_v58 = vld [vmem:[%s4781_s22 + $0xd8] sm:$0xff]  ;;  %s5151_s17 = scalar_lea.vmem [#allocation8], %s4295_s4  ;;  %s4579_s25 = smov [#allocation8]  }
  0x78   : > { %v363_v16 = vld [vmem:[%s4781_s22 + $0x3c0] sm:$0xff]  ;;  %v364_v18 = vld [vmem:[%s4781_s22 + $0x3c8] sm:$0xff]  ;;  %2517 = vmatpush1.bf16.msra.mxu0 %v3901_v6  ;;  %2558 = vmatpush1.bf16.msra.mxu1 %v3903_v10  ;;  %v3951_v20 = vcombine.low %v292_v12, %v316_v13  ;;  %v241_v59 = vld [vmem:[#allocation2] sm:$0x3]  ;;  %v3908_v63 = vcombine.high %v246_v57, %v270_v58  ;;  %v3905_v6 = vcombine.low %v245_v55, %v269_v56  ;;  %s3791_s24 = sshll.u32 %s5151_s17, 4  ;;  %s5370_s5 = scalar_lea.hbm %s5418_s3, %s4290_s20  ;;  %s5372_s24 = int_to_ptr.vmem [resolvable:$true] %s3791_s24 }
  0x79   : > { %2518 = vmatprep.subr.bf16.mxu0 %v3950_v11  ;;  %v3998_v21 = vcombine.high %v339_v14, %v363_v16  ;;  %2559 = vmatprep.subr.bf16.mxu1 %v3952_v15  ;;  %v4000_v22 = vcombine.high %v340_v17, %v364_v18  ;;  %v387_v23 = vld [vmem:[%s4781_s22 + $0x480] sm:$0xff]  ;;  %v388_v25 = vld [vmem:[%s4781_s22 + $0x488] sm:$0xff]  ;;  %v3997_v27 = vcombine.low %v339_v14, %v363_v16  ;;  %v293_v1 = vld [vmem:[%s4781_s22 + $0x190] sm:$0xff]  ;;  %s4499_s10 = scalar_lea.vmem %s5372_s24, 1536  ;;  %s4503_s11 = sshll.u32 %s4579_s25, 4  ;;  %s4504_s11 = int_to_ptr.vmem [resolvable:$false] %s4503_s11 }
  0x7a   : > { %v411_v24 = vld [vmem:[%s4781_s22 + $0x540] sm:$0xff]  ;;  %v412_v26 = vld [vmem:[%s4781_s22 + $0x548] sm:$0xff]  ;;  %v3999_v28 = vcombine.low %v340_v17, %v364_v18  ;;  %v317_v2 = vld [vmem:[%s4781_s22 + $0x250] sm:$0xff]  ;;  %v4825_v3 = vpack.c.bf16 %v241_v59, %v241_v59  ;;  %v3907_v7 = vcombine.low %v246_v57, %v270_v58  ;;  %p4500_p12 = scmp.ne.s32.totalorder %s5372_s24, %s4499_s10  ;;  %s4505_s7 = scalar_lea.vmem %s4504_s11, 3072 }
  0x7b   : > { %v4046_v29 = vcombine.high %v387_v23, %v411_v24  ;;  %v4048_v30 = vcombine.high %v388_v25, %v412_v26  ;;  %v435_v31 = vld [vmem:[%s4781_s22 + $0x600] sm:$0xff]  ;;  %v436_v33 = vld [vmem:[%s4781_s22 + $0x608] sm:$0xff]  ;;  %v4045_v35 = vcombine.low %v387_v23, %v411_v24  ;;  %v4047_v36 = vcombine.low %v388_v25, %v412_v26  ;;  %v294_v4 = vld [vmem:[%s4781_s22 + $0x198] sm:$0xff]  ;;  %p4506_p13 = scmp.lt.s32.totalorder %s5372_s24, %s4504_s11  ;;  %p4507_p3 = scmp.lt.s32.totalorder %s4505_s7, %s4499_s10 }
  0x7c   : > { %2519 = vmatpush1.bf16.msra.mxu0 %v3949_v19  ;;  %2560 = vmatpush1.bf16.msra.mxu1 %v3951_v20  ;;  %v459_v32 = vld [vmem:[%s4781_s22 + $0x6c0] sm:$0xff]  ;;  %v460_v34 = vld [vmem:[%s4781_s22 + $0x6c8] sm:$0xff]  ;;  %v318_v5 = vld [vmem:[%s4781_s22 + $0x258] sm:$0xff]  ;;  %v3954_v8 = vcombine.high %v293_v1, %v317_v2  ;;  %v3953_v14 = vcombine.low %v293_v1, %v317_v2  ;;  %p4501_p0 = pnand %p4500_p12, %p5439_p4 }
  0x7d   : > { %2520 = vmatprep.subr.bf16.mxu0 %v3998_v21  ;;  %2561 = vmatprep.subr.bf16.mxu1 %v4000_v22  ;;  %v4094_v37 = vcombine.high %v435_v31, %v459_v32  ;;  %v4096_v38 = vcombine.high %v436_v33, %v460_v34  ;;  %v483_v39 = vld [vmem:[%s4781_s22 + $0x780] sm:$0xff]  ;;  %v484_v41 = vld [vmem:[%s4781_s22 + $0x788] sm:$0xff]  ;;  %v4093_v43 = vcombine.low %v435_v31, %v459_v32  ;;  %v341_v10 = vld [vmem:[%s4781_s22 + $0x310] sm:$0xff]  ;;  %p4508_p8 = por %p4507_p3, %p4506_p13 }
  0x7e   : > { %v507_v40 = vld [vmem:[%s4781_s22 + $0x840] sm:$0xff]  ;;  %v508_v42 = vld [vmem:[%s4781_s22 + $0x848] sm:$0xff]  ;;  %v4095_v44 = vcombine.low %v436_v33, %v460_v34  ;;  %v3956_v9 = vcombine.high %v294_v4, %v318_v5  ;;  %v365_v11 = vld [vmem:[%s4781_s22 + $0x3d0] sm:$0xff]  ;;  %v3955_v15 = vcombine.low %v294_v4, %v318_v5  ;;  %p4502_p11 = pneg %p4501_p0 }
  0x7f   : > { %v4142_v45 = vcombine.high %v483_v39, %v507_v40  ;;  %v4144_v46 = vcombine.high %v484_v41, %v508_v42  ;;  %v531_v47 = vld [vmem:[%s4781_s22 + $0x900] sm:$0x33]  ;;  %v532_v48 = vld [vmem:[%s4781_s22 + $0x908] sm:$0x33]  ;;  %v4141_v49 = vcombine.low %v483_v39, %v507_v40  ;;  %v4143_v50 = vcombine.low %v484_v41, %v508_v42  ;;  %v342_v12 = vld [vmem:[%s4781_s22 + $0x318] sm:$0xff] }
  0x80   : > { %2521 = vmatpush1.bf16.msra.mxu0 %v3997_v27  ;;  %2562 = vmatpush1.bf16.msra.mxu1 %v3999_v28  ;;  %v4190_v51 = vcombine.high %v531_v47, %v531_v47  ;;  %v4189_v52 = vcombine.low %v531_v47, %v531_v47  ;;  %v4192_v53 = vcombine.high %v532_v48, %v532_v48  ;;  %v366_v13 = vld [vmem:[%s4781_s22 + $0x3d8] sm:$0xff]  ;;  %v389_v18 = vld [vmem:[%s4781_s22 + $0x490] sm:$0xff]  ;;  %v295_v58 = vld [vmem:[%s4781_s22 + $0x1a0] sm:$0xff]  ;;  %p4509_p1 = pnand %p4508_p8, %p4502_p11 }
  0x81   : > { %2522 = vmatprep.subr.bf16.mxu0 %v4046_v29  ;;  %2563 = vmatprep.subr.bf16.mxu1 %v4048_v30  ;;  %v4191_v54 = vcombine.low %v532_v48, %v532_v48  ;;  %v4002_v16 = vcombine.high %v341_v10, %v365_v11  ;;  %v4004_v17 = vcombine.high %v342_v12, %v366_v13  ;;  %v413_v19 = vld [vmem:[%s4781_s22 + $0x550] sm:$0xff]  ;;  %v390_v20 = vld [vmem:[%s4781_s22 + $0x498] sm:$0xff]  ;;  %v319_v59 = vld [vmem:[%s4781_s22 + $0x260] sm:$0xff] }
  0x82   : > { %v2373_v60 = vsel %vm2371_vm0, %v4189_v52, 0  ;;  %v414_v21 = vld [vmem:[%s4781_s22 + $0x558] sm:$0xff]  ;;  %v4001_v22 = vcombine.low %v341_v10, %v365_v11  ;;  %v4003_v23 = vcombine.low %v342_v12, %v366_v13  ;;  %v4050_v24 = vcombine.high %v389_v18, %v413_v19  ;;  %v437_v26 = vld [vmem:[%s4781_s22 + $0x610] sm:$0xff]  ;;  %v248_v52 = vld [vmem:[%s4781_s22 + $0x28] sm:$0xff] }
  0x83   : > { %v2379_v62 = vsel %vm2371_vm0, %v4191_v54, 0  ;;  %v4052_v25 = vcombine.high %v390_v20, %v414_v21  ;;  %v461_v27 = vld [vmem:[%s4781_s22 + $0x6d0] sm:$0xff]  ;;  %v438_v28 = vld [vmem:[%s4781_s22 + $0x618] sm:$0xff]  ;;  %v4049_v30 = vcombine.low %v389_v18, %v413_v19  ;;  %v4051_v31 = vcombine.low %v390_v20, %v414_v21  ;;  %v343_v4 = vld [vmem:[%s4781_s22 + $0x320] sm:$0xff] }
  0x84   : > { %2523 = vmatpush1.bf16.msra.mxu0 %v4045_v35  ;;  %2564 = vmatpush1.bf16.msra.mxu1 %v4047_v36  ;;  %v462_v29 = vld [vmem:[%s4781_s22 + $0x6d8] sm:$0xff]  ;;  %v4098_v32 = vcombine.high %v437_v26, %v461_v27  ;;  %v485_v34 = vld [vmem:[%s4781_s22 + $0x790] sm:$0xff]  ;;  %v3958_v1 = vcombine.high %v295_v58, %v319_v59  ;;  %v367_v5 = vld [vmem:[%s4781_s22 + $0x3e0] sm:$0xff] }
  0x85   : > { %2524 = vmatprep.subr.bf16.mxu0 %v4094_v37  ;;  %2565 = vmatprep.subr.bf16.mxu1 %v4096_v38  ;;  %v4100_v33 = vcombine.high %v438_v28, %v462_v29  ;;  %v509_v35 = vld [vmem:[%s4781_s22 + $0x850] sm:$0xff]  ;;  %v486_v36 = vld [vmem:[%s4781_s22 + $0x798] sm:$0xff]  ;;  %v4097_v38 = vcombine.low %v437_v26, %v461_v27  ;;  %v4099_v39 = vcombine.low %v438_v28, %v462_v29  ;;  %v391_v12 = vld [vmem:[%s4781_s22 + $0x4a0] sm:$0xff] }
  0x86   : > { %v510_v37 = vld [vmem:[%s4781_s22 + $0x858] sm:$0xff]  ;;  %v4146_v40 = vcombine.high %v485_v34, %v509_v35  ;;  %v533_v42 = vld [vmem:[%s4781_s22 + $0x910] sm:$0x33]  ;;  %v4006_v10 = vcombine.high %v343_v4, %v367_v5  ;;  %v415_v13 = vld [vmem:[%s4781_s22 + $0x560] sm:$0xff] }
  0x87   : > { %v4148_v41 = vcombine.high %v486_v36, %v510_v37  ;;  %v4193_v47 = vcombine.low %v533_v42, %v533_v42  ;;  %v4054_v18 = vcombine.high %v391_v12, %v415_v13  ;;  %v439_v20 = vld [vmem:[%s4781_s22 + $0x620] sm:$0xff] }
  0x88   : > { %2525 = vmatpush1.bf16.msra.mxu0 %v4093_v43  ;;  %2566 = vmatpush1.bf16.msra.mxu1 %v4095_v44  ;;  %v534_v43 = vld [vmem:[%s4781_s22 + $0x918] sm:$0x33]  ;;  %v4145_v44 = vcombine.low %v485_v34, %v509_v35  ;;  %v463_v21 = vld [vmem:[%s4781_s22 + $0x6e0] sm:$0xff] }
  0x89   : > { %2526 = vmatprep.subr.bf16.mxu0 %v4142_v45  ;;  %2567 = vmatprep.subr.bf16.mxu1 %v4144_v46  ;;  %v4147_v45 = vcombine.low %v486_v36, %v510_v37  ;;  %v4194_v46 = vcombine.high %v533_v42, %v533_v42  ;;  %v4196_v48 = vcombine.high %v534_v43, %v534_v43  ;;  %v2385_v54 = vsel %vm2371_vm0, %v4193_v47, 0  ;;  %v487_v28 = vld [vmem:[%s4781_s22 + $0x7a0] sm:$0xff]  ;;  %v536_v37 = vld [vmem:[%s4781_s22 + $0x928] sm:$0x33]  ;;  %v274_v47 = vld [vmem:[%s4781_s22 + $0xf8] sm:$0xff] }
  0x8a   : > { %v4102_v26 = vcombine.high %v439_v20, %v463_v21  ;;  %v511_v29 = vld [vmem:[%s4781_s22 + $0x860] sm:$0xff]  ;;  %v4200_v42 = vcombine.high %v536_v37, %v536_v37 }
  0x8b   : > { %v4150_v34 = vcombine.high %v487_v28, %v511_v29  ;;  %v535_v36 = vld [vmem:[%s4781_s22 + $0x920] sm:$0x33] }
  0x8c   : > { %2527 = vmatpush1.bf16.msra.mxu0 %v4141_v49  ;;  %2568 = vmatpush1.bf16.msra.mxu1 %v4143_v50  ;;  %v4195_v49 = vcombine.low %v534_v43, %v534_v43  ;;  %v247_v50 = vld [vmem:[%s4781_s22 + $0x20] sm:$0xff]  ;;  %v4199_v43 = vcombine.low %v536_v37, %v536_v37 }
  0x8d   : > { %4237 = vmatprep.subr.msk.bf16.mxu0 %vm2371_vm0, %v4190_v51  ;;  %4239 = vmatprep.subr.msk.bf16.mxu1 %vm2371_vm0, %v4192_v53  ;;  %v271_v51 = vld [vmem:[%s4781_s22 + $0xe0] sm:$0xff]  ;;  %v272_v53 = vld [vmem:[%s4781_s22 + $0xe8] sm:$0xff] }
  0x8e   : > { %v3910_v55 = vcombine.high %v247_v50, %v271_v51  ;;  %v2391_v56 = vsel %vm2371_vm0, %v4195_v49, 0  ;;  %v3912_v57 = vcombine.high %v248_v52, %v272_v53 }
  0x90   : > { %2529 = vmatpush1.bf16.msra.mxu0 %v2373_v60  ;;  %2570 = vmatpush1.bf16.msra.mxu1 %v2379_v62  ;;  %v296_v60 = vld [vmem:[%s4781_s22 + $0x1a8] sm:$0xff]  ;;  %v3909_v62 = vcombine.low %v247_v50, %v271_v51  ;;  %v2403_v50 = vsel %vm2371_vm0, %v4199_v43, 0 }
  0x91   : > { %2598 = vmatprep.subr.bf16.mxu0 %v3906_v61  ;;  %2639 = vmatprep.subr.bf16.mxu1 %v3908_v63  ;;  %v320_v61 = vld [vmem:[%s4781_s22 + $0x268] sm:$0xff]  ;;  %v3911_v63 = vcombine.low %v248_v52, %v272_v53  ;;  %v297_v52 = vld [vmem:[%s4781_s22 + $0x1b0] sm:$0xff] }
  0x92   : > { %v3960_v2 = vcombine.high %v296_v60, %v320_v61  ;;  %v321_v53 = vld [vmem:[%s4781_s22 + $0x270] sm:$0xff] }
  0x93   : > { %4238 = vmatmul.mubr.msk.bf16.vlgmr.msra.gmra.mrb[0].mxu0 %vm2367_vm1, %v4825_v3  ;;  %4240 = vmatmul.mubr.msk.bf16.vlgmr.msra.gmra.mrb[0].mxu1 %vm2367_vm1, %v4825_v3 }
  0x94   : > { %2599 = vmatpush1.bf16.msra.mxu0 %v3905_v6  ;;  %2640 = vmatpush1.bf16.msra.mxu1 %v3907_v7  ;;  %v344_v6 = vld [vmem:[%s4781_s22 + $0x328] sm:$0xff] }
  0x95   : > { %2600 = vmatprep.subr.bf16.mxu0 %v3954_v8  ;;  %2641 = vmatprep.subr.bf16.mxu1 %v3956_v9  ;;  %v368_v7 = vld [vmem:[%s4781_s22 + $0x3e8] sm:$0xff]  ;;  %v3957_v8 = vcombine.low %v295_v58, %v319_v59  ;;  %v3959_v9 = vcombine.low %v296_v60, %v320_v61  ;;  %v3962_v58 = vcombine.high %v297_v52, %v321_v53  ;;  %v345_v60 = vld [vmem:[%s4781_s22 + $0x330] sm:$0xff] }
  0x96   : > { %2630 = vmatprep.mubr.bf16.mxu0 %v4577_v0  ;;  %2671 = vmatprep.mubr.bf16.mxu1 %v4577_v0  ;;  %v4008_v11 = vcombine.high %v344_v6, %v368_v7  ;;  %v369_v61 = vld [vmem:[%s4781_s22 + $0x3f0] sm:$0xff] }
  0x98   : > { %2601 = vmatpush1.bf16.msra.mxu0 %v3953_v14  ;;  %2642 = vmatpush1.bf16.msra.mxu1 %v3955_v15  ;;  %v392_v14 = vld [vmem:[%s4781_s22 + $0x4a8] sm:$0xff] }
  0x99   : > { %2602 = vmatprep.subr.bf16.mxu0 %v4002_v16  ;;  %2643 = vmatprep.subr.bf16.mxu1 %v4004_v17  ;;  %v416_v15 = vld [vmem:[%s4781_s22 + $0x568] sm:$0xff]  ;;  %v4005_v16 = vcombine.low %v343_v4, %v367_v5  ;;  %v4007_v17 = vcombine.low %v344_v6, %v368_v7  ;;  %v4010_v4 = vcombine.high %v345_v60, %v369_v61  ;;  %v393_v6 = vld [vmem:[%s4781_s22 + $0x4b0] sm:$0xff] }
  0x9a   : > { %v4056_v19 = vcombine.high %v392_v14, %v416_v15  ;;  %v417_v7 = vld [vmem:[%s4781_s22 + $0x570] sm:$0xff] }
  0x9c   : > { %2603 = vmatpush1.bf16.msra.mxu0 %v4001_v22  ;;  %2644 = vmatpush1.bf16.msra.mxu1 %v4003_v23  ;;  %v440_v22 = vld [vmem:[%s4781_s22 + $0x628] sm:$0xff] }
  0x9d   : > { %2604 = vmatprep.subr.bf16.mxu0 %v4050_v24  ;;  %2645 = vmatprep.subr.bf16.mxu1 %v4052_v25  ;;  %v464_v23 = vld [vmem:[%s4781_s22 + $0x6e8] sm:$0xff]  ;;  %v4053_v24 = vcombine.low %v391_v12, %v415_v13  ;;  %v4055_v25 = vcombine.low %v392_v14, %v416_v15  ;;  %v4058_v12 = vcombine.high %v393_v6, %v417_v7  ;;  %v441_v14 = vld [vmem:[%s4781_s22 + $0x630] sm:$0xff] }
  0x9e   : > { %v4104_v27 = vcombine.high %v440_v22, %v464_v23  ;;  %v465_v15 = vld [vmem:[%s4781_s22 + $0x6f0] sm:$0xff] }
  0xa0   : > { %2605 = vmatpush1.bf16.msra.mxu0 %v4049_v30  ;;  %2646 = vmatpush1.bf16.msra.mxu1 %v4051_v31  ;;  %v488_v30 = vld [vmem:[%s4781_s22 + $0x7a8] sm:$0xff] }
  0xa1   : > { %2606 = vmatprep.subr.bf16.mxu0 %v4098_v32  ;;  %2647 = vmatprep.subr.bf16.mxu1 %v4100_v33  ;;  %v512_v31 = vld [vmem:[%s4781_s22 + $0x868] sm:$0xff]  ;;  %v4101_v32 = vcombine.low %v439_v20, %v463_v21  ;;  %v4103_v33 = vcombine.low %v440_v22, %v464_v23  ;;  %v4106_v20 = vcombine.high %v441_v14, %v465_v15  ;;  %v489_v22 = vld [vmem:[%s4781_s22 + $0x7b0] sm:$0xff] }
  0xa2   : > { %v4152_v35 = vcombine.high %v488_v30, %v512_v31  ;;  %v513_v23 = vld [vmem:[%s4781_s22 + $0x870] sm:$0xff] }
  0xa4   : > { %2607 = vmatpush1.bf16.msra.mxu0 %v4097_v38  ;;  %2648 = vmatpush1.bf16.msra.mxu1 %v4099_v39  ;;  %v4149_v38 = vcombine.low %v487_v28, %v511_v29  ;;  %v4151_v39 = vcombine.low %v488_v30, %v512_v31  ;;  %v4154_v28 = vcombine.high %v489_v22, %v513_v23  ;;  %v537_v30 = vld [vmem:[%s4781_s22 + $0x930] sm:$0x33]  ;;  %v538_v31 = vld [vmem:[%s4781_s22 + $0x938] sm:$0x33] }
  0xa5   : > { %2608 = vmatprep.subr.bf16.mxu0 %v4146_v40  ;;  %2649 = vmatprep.subr.bf16.mxu1 %v4148_v41  ;;  %v4198_v40 = vcombine.high %v535_v36, %v535_v36  ;;  %v4197_v41 = vcombine.low %v535_v36, %v535_v36  ;;  %v4204_v36 = vcombine.high %v538_v31, %v538_v31 }
  0xa6   : > { %v4203_v37 = vcombine.low %v538_v31, %v538_v31 }
  0xa8   : > { %2609 = vmatpush1.bf16.msra.mxu0 %v4145_v44  ;;  %2650 = vmatpush1.bf16.msra.mxu1 %v4147_v45  ;;  %v249_v44 = vld [vmem:[%s4781_s22 + $0x30] sm:$0xff] }
  0xa9   : > { %4241 = vmatprep.subr.msk.bf16.mxu0 %vm2371_vm0, %v4194_v46  ;;  %4243 = vmatprep.subr.msk.bf16.mxu1 %vm2371_vm0, %v4196_v48  ;;  %v273_v45 = vld [vmem:[%s4781_s22 + $0xf0] sm:$0xff]  ;;  %v250_v46 = vld [vmem:[%s4781_s22 + $0x38] sm:$0xff]  ;;  %v2397_v48 = vsel %vm2371_vm0, %v4197_v41, 0  ;;  %v276_v41 = vld [vmem:[%s4781_s22 + $0x108] sm:$0xff] }
  0xaa   : > { %v3914_v49 = vcombine.high %v249_v44, %v273_v45  ;;  %v3916_v51 = vcombine.high %v250_v46, %v274_v47 }
  0xac   : > { %2611 = vmatpush1.bf16.msra.mxu0 %v2385_v54  ;;  %2652 = vmatpush1.bf16.msra.mxu1 %v2391_v56  ;;  %v298_v54 = vld [vmem:[%s4781_s22 + $0x1b8] sm:$0xff]  ;;  %v3913_v56 = vcombine.low %v249_v44, %v273_v45  ;;  %v2415_v44 = vsel %vm2371_vm0, %v4203_v37, 0 }
  0xad   : > { %2680 = vmatprep.subr.bf16.mxu0 %v3910_v55  ;;  %2721 = vmatprep.subr.bf16.mxu1 %v3912_v57  ;;  %v322_v55 = vld [vmem:[%s4781_s22 + $0x278] sm:$0xff]  ;;  %v3915_v57 = vcombine.low %v250_v46, %v274_v47  ;;  %v299_v46 = vld [vmem:[%s4781_s22 + $0x1c0] sm:$0xff] }
  0xae   : > { %v3964_v59 = vcombine.high %v298_v54, %v322_v55  ;;  %v323_v47 = vld [vmem:[%s4781_s22 + $0x280] sm:$0xff] }
  0xaf   : > { %4242 = vmatmul.mubr.msk.bf16.vlgmr.msra.gmra.mrb[4].mxu0 %vm2367_vm1, %v4825_v3  ;;  %4244 = vmatmul.mubr.msk.bf16.vlgmr.msra.gmra.mrb[4].mxu1 %vm2367_vm1, %v4825_v3 }
  0xb0   : > { %2681 = vmatpush1.bf16.msra.mxu0 %v3909_v62  ;;  %2722 = vmatpush1.bf16.msra.mxu1 %v3911_v63  ;;  %v346_v62 = vld [vmem:[%s4781_s22 + $0x338] sm:$0xff] }
  0xb1   : > { %2682 = vmatprep.subr.bf16.mxu0 %v3958_v1  ;;  %2723 = vmatprep.subr.bf16.mxu1 %v3960_v2  ;;  %v370_v63 = vld [vmem:[%s4781_s22 + $0x3f8] sm:$0xff]  ;;  %v3961_v1 = vcombine.low %v297_v52, %v321_v53  ;;  %v3963_v2 = vcombine.low %v298_v54, %v322_v55  ;;  %v3966_v52 = vcombine.high %v299_v46, %v323_v47  ;;  %v347_v54 = vld [vmem:[%s4781_s22 + $0x340] sm:$0xff] }
  0xb2   : > { %2712 = vmatprep.mubr.bf16.mxu0 %v4577_v0  ;;  %2753 = vmatprep.mubr.bf16.mxu1 %v4577_v0  ;;  %v4012_v5 = vcombine.high %v346_v62, %v370_v63  ;;  %v371_v55 = vld [vmem:[%s4781_s22 + $0x400] sm:$0xff] }
  0xb4   : > { %2683 = vmatpush1.bf16.msra.mxu0 %v3957_v8  ;;  %2724 = vmatpush1.bf16.msra.mxu1 %v3959_v9  ;;  %v394_v8 = vld [vmem:[%s4781_s22 + $0x4b8] sm:$0xff] }
  0xb5   : > { %2684 = vmatprep.subr.bf16.mxu0 %v4006_v10  ;;  %2725 = vmatprep.subr.bf16.mxu1 %v4008_v11  ;;  %v418_v9 = vld [vmem:[%s4781_s22 + $0x578] sm:$0xff]  ;;  %v4009_v10 = vcombine.low %v345_v60, %v369_v61  ;;  %v4011_v11 = vcombine.low %v346_v62, %v370_v63  ;;  %v4014_v60 = vcombine.high %v347_v54, %v371_v55  ;;  %v395_v62 = vld [vmem:[%s4781_s22 + $0x4c0] sm:$0xff] }
  0xb6   : > { %v4060_v13 = vcombine.high %v394_v8, %v418_v9  ;;  %v419_v63 = vld [vmem:[%s4781_s22 + $0x580] sm:$0xff] }
  0xb8   : > { %2685 = vmatpush1.bf16.msra.mxu0 %v4005_v16  ;;  %2726 = vmatpush1.bf16.msra.mxu1 %v4007_v17  ;;  %v442_v16 = vld [vmem:[%s4781_s22 + $0x638] sm:$0xff] }
  0xb9   : > { %2686 = vmatprep.subr.bf16.mxu0 %v4054_v18  ;;  %2727 = vmatprep.subr.bf16.mxu1 %v4056_v19  ;;  %v466_v17 = vld [vmem:[%s4781_s22 + $0x6f8] sm:$0xff]  ;;  %v4057_v18 = vcombine.low %v393_v6, %v417_v7  ;;  %v4059_v19 = vcombine.low %v394_v8, %v418_v9  ;;  %v4062_v6 = vcombine.high %v395_v62, %v419_v63  ;;  %v443_v8 = vld [vmem:[%s4781_s22 + $0x640] sm:$0xff] }
  0xba   : > { %v4108_v21 = vcombine.high %v442_v16, %v466_v17  ;;  %v467_v9 = vld [vmem:[%s4781_s22 + $0x700] sm:$0xff] }
  0xbc   : > { %2687 = vmatpush1.bf16.msra.mxu0 %v4053_v24  ;;  %2728 = vmatpush1.bf16.msra.mxu1 %v4055_v25  ;;  %v490_v24 = vld [vmem:[%s4781_s22 + $0x7b8] sm:$0xff] }
  0xbd   : > { %2688 = vmatprep.subr.bf16.mxu0 %v4102_v26  ;;  %2729 = vmatprep.subr.bf16.mxu1 %v4104_v27  ;;  %v514_v25 = vld [vmem:[%s4781_s22 + $0x878] sm:$0xff]  ;;  %v4105_v26 = vcombine.low %v441_v14, %v465_v15  ;;  %v4107_v27 = vcombine.low %v442_v16, %v466_v17  ;;  %v4110_v14 = vcombine.high %v443_v8, %v467_v9  ;;  %v491_v16 = vld [vmem:[%s4781_s22 + $0x7c0] sm:$0xff] }
  0xbe   : > { %v4156_v29 = vcombine.high %v490_v24, %v514_v25  ;;  %v515_v17 = vld [vmem:[%s4781_s22 + $0x880] sm:$0xff] }
  0xc0   : > { %2689 = vmatpush1.bf16.msra.mxu0 %v4101_v32  ;;  %2730 = vmatpush1.bf16.msra.mxu1 %v4103_v33  ;;  %v4153_v32 = vcombine.low %v489_v22, %v513_v23  ;;  %v4155_v33 = vcombine.low %v490_v24, %v514_v25  ;;  %v4158_v22 = vcombine.high %v491_v16, %v515_v17  ;;  %v539_v24 = vld [vmem:[%s4781_s22 + $0x940] sm:$0x33]  ;;  %v540_v25 = vld [vmem:[%s4781_s22 + $0x948] sm:$0x33] }
  0xc1   : > { %2690 = vmatprep.subr.bf16.mxu0 %v4150_v34  ;;  %2731 = vmatprep.subr.bf16.mxu1 %v4152_v35  ;;  %v4202_v34 = vcombine.high %v537_v30, %v537_v30  ;;  %v4201_v35 = vcombine.low %v537_v30, %v537_v30  ;;  %v4208_v30 = vcombine.high %v540_v25, %v540_v25 }
  0xc2   : > { %v4207_v31 = vcombine.low %v540_v25, %v540_v25 }
  0xc4   : > { %2691 = vmatpush1.bf16.msra.mxu0 %v4149_v38  ;;  %2732 = vmatpush1.bf16.msra.mxu1 %v4151_v39  ;;  %v251_v38 = vld [vmem:[%s4781_s22 + $0x40] sm:$0xff] }
  0xc5   : > { %4245 = vmatprep.subr.msk.bf16.mxu0 %vm2371_vm0, %v4198_v40  ;;  %4247 = vmatprep.subr.msk.bf16.mxu1 %vm2371_vm0, %v4200_v42  ;;  %v275_v39 = vld [vmem:[%s4781_s22 + $0x100] sm:$0xff]  ;;  %v252_v40 = vld [vmem:[%s4781_s22 + $0x48] sm:$0xff]  ;;  %v2409_v42 = vsel %vm2371_vm0, %v4201_v35, 0  ;;  %v278_v35 = vld [vmem:[%s4781_s22 + $0x118] sm:$0xff] }
  0xc6   : > { %v3918_v43 = vcombine.high %v251_v38, %v275_v39  ;;  %v3920_v45 = vcombine.high %v252_v40, %v276_v41 }
  0xc8   : > { %2693 = vmatpush1.bf16.msra.mxu0 %v2397_v48  ;;  %2734 = vmatpush1.bf16.msra.mxu1 %v2403_v50  ;;  %v300_v48 = vld [vmem:[%s4781_s22 + $0x1c8] sm:$0xff]  ;;  %v3917_v50 = vcombine.low %v251_v38, %v275_v39  ;;  %v2427_v38 = vsel %vm2371_vm0, %v4207_v31, 0 }
  0xc9   : > { %2762 = vmatprep.subr.bf16.mxu0 %v3914_v49  ;;  %2803 = vmatprep.subr.bf16.mxu1 %v3916_v51  ;;  %v324_v49 = vld [vmem:[%s4781_s22 + $0x288] sm:$0xff]  ;;  %v3919_v51 = vcombine.low %v252_v40, %v276_v41  ;;  %v301_v40 = vld [vmem:[%s4781_s22 + $0x1d0] sm:$0xff] }
  0xca   : > { %v3968_v53 = vcombine.high %v300_v48, %v324_v49  ;;  %v325_v41 = vld [vmem:[%s4781_s22 + $0x290] sm:$0xff] }
  0xcb   : > { %4246 = vmatmul.mubr.msk.bf16.vlgmr.msra.gmra.mrb[8].mxu0 %vm2367_vm1, %v4825_v3  ;;  %4248 = vmatmul.mubr.msk.bf16.vlgmr.msra.gmra.mrb[8].mxu1 %vm2367_vm1, %v4825_v3 }
  0xcc   : > { %2763 = vmatpush1.bf16.msra.mxu0 %v3913_v56  ;;  %2804 = vmatpush1.bf16.msra.mxu1 %v3915_v57  ;;  %v348_v56 = vld [vmem:[%s4781_s22 + $0x348] sm:$0xff] }
  0xcd   : > { %2764 = vmatprep.subr.bf16.mxu0 %v3962_v58  ;;  %2805 = vmatprep.subr.bf16.mxu1 %v3964_v59  ;;  %v372_v57 = vld [vmem:[%s4781_s22 + $0x408] sm:$0xff]  ;;  %v3965_v58 = vcombine.low %v299_v46, %v323_v47  ;;  %v3967_v59 = vcombine.low %v300_v48, %v324_v49  ;;  %v3970_v46 = vcombine.high %v301_v40, %v325_v41  ;;  %v349_v48 = vld [vmem:[%s4781_s22 + $0x350] sm:$0xff] }
  0xce   : > { %2794 = vmatprep.mubr.bf16.mxu0 %v4577_v0  ;;  %2835 = vmatprep.mubr.bf16.mxu1 %v4577_v0  ;;  %v4016_v61 = vcombine.high %v348_v56, %v372_v57  ;;  %v373_v49 = vld [vmem:[%s4781_s22 + $0x410] sm:$0xff] }
  0xd0   : > { %2765 = vmatpush1.bf16.msra.mxu0 %v3961_v1  ;;  %2806 = vmatpush1.bf16.msra.mxu1 %v3963_v2  ;;  %v396_v1 = vld [vmem:[%s4781_s22 + $0x4c8] sm:$0xff] }
  0xd1   : > { %2766 = vmatprep.subr.bf16.mxu0 %v4010_v4  ;;  %2807 = vmatprep.subr.bf16.mxu1 %v4012_v5  ;;  %v420_v2 = vld [vmem:[%s4781_s22 + $0x588] sm:$0xff]  ;;  %v4013_v4 = vcombine.low %v347_v54, %v371_v55  ;;  %v4015_v5 = vcombine.low %v348_v56, %v372_v57  ;;  %v4018_v54 = vcombine.high %v349_v48, %v373_v49  ;;  %v397_v56 = vld [vmem:[%s4781_s22 + $0x4d0] sm:$0xff] }
  0xd2   : > { %v4064_v7 = vcombine.high %v396_v1, %v420_v2  ;;  %v421_v57 = vld [vmem:[%s4781_s22 + $0x590] sm:$0xff] }
  0xd4   : > { %2767 = vmatpush1.bf16.msra.mxu0 %v4009_v10  ;;  %2808 = vmatpush1.bf16.msra.mxu1 %v4011_v11  ;;  %v444_v10 = vld [vmem:[%s4781_s22 + $0x648] sm:$0xff] }
  0xd5   : > { %2768 = vmatprep.subr.bf16.mxu0 %v4058_v12  ;;  %2809 = vmatprep.subr.bf16.mxu1 %v4060_v13  ;;  %v468_v11 = vld [vmem:[%s4781_s22 + $0x708] sm:$0xff]  ;;  %v4061_v12 = vcombine.low %v395_v62, %v419_v63  ;;  %v4063_v13 = vcombine.low %v396_v1, %v420_v2  ;;  %v4066_v62 = vcombine.high %v397_v56, %v421_v57  ;;  %v445_v1 = vld [vmem:[%s4781_s22 + $0x650] sm:$0xff] }
  0xd6   : > { %v4112_v15 = vcombine.high %v444_v10, %v468_v11  ;;  %v469_v2 = vld [vmem:[%s4781_s22 + $0x710] sm:$0xff] }
  0xd8   : > { %2769 = vmatpush1.bf16.msra.mxu0 %v4057_v18  ;;  %2810 = vmatpush1.bf16.msra.mxu1 %v4059_v19  ;;  %v492_v18 = vld [vmem:[%s4781_s22 + $0x7c8] sm:$0xff] }
  0xd9   : > { %2770 = vmatprep.subr.bf16.mxu0 %v4106_v20  ;;  %2811 = vmatprep.subr.bf16.mxu1 %v4108_v21  ;;  %v516_v19 = vld [vmem:[%s4781_s22 + $0x888] sm:$0xff]  ;;  %v4109_v20 = vcombine.low %v443_v8, %v467_v9  ;;  %v4111_v21 = vcombine.low %v444_v10, %v468_v11  ;;  %v4114_v8 = vcombine.high %v445_v1, %v469_v2  ;;  %v493_v10 = vld [vmem:[%s4781_s22 + $0x7d0] sm:$0xff] }
  0xda   : > { %v4160_v23 = vcombine.high %v492_v18, %v516_v19  ;;  %v517_v11 = vld [vmem:[%s4781_s22 + $0x890] sm:$0xff] }
  0xdc   : > { %2771 = vmatpush1.bf16.msra.mxu0 %v4105_v26  ;;  %2812 = vmatpush1.bf16.msra.mxu1 %v4107_v27  ;;  %v4157_v26 = vcombine.low %v491_v16, %v515_v17  ;;  %v4159_v27 = vcombine.low %v492_v18, %v516_v19  ;;  %v4162_v16 = vcombine.high %v493_v10, %v517_v11  ;;  %v541_v18 = vld [vmem:[%s4781_s22 + $0x950] sm:$0x33]  ;;  %v542_v19 = vld [vmem:[%s4781_s22 + $0x958] sm:$0x33] }
  0xdd   : > { %2772 = vmatprep.subr.bf16.mxu0 %v4154_v28  ;;  %2813 = vmatprep.subr.bf16.mxu1 %v4156_v29  ;;  %v4206_v28 = vcombine.high %v539_v24, %v539_v24  ;;  %v4205_v29 = vcombine.low %v539_v24, %v539_v24  ;;  %v4212_v24 = vcombine.high %v542_v19, %v542_v19 }
  0xde   : > { %v4211_v25 = vcombine.low %v542_v19, %v542_v19 }
  0xe0   : > { %2773 = vmatpush1.bf16.msra.mxu0 %v4153_v32  ;;  %2814 = vmatpush1.bf16.msra.mxu1 %v4155_v33  ;;  %v253_v32 = vld [vmem:[%s4781_s22 + $0x50] sm:$0xff] }
  0xe1   : > { %4249 = vmatprep.subr.msk.bf16.mxu0 %vm2371_vm0, %v4202_v34  ;;  %4251 = vmatprep.subr.msk.bf16.mxu1 %vm2371_vm0, %v4204_v36  ;;  %v277_v33 = vld [vmem:[%s4781_s22 + $0x110] sm:$0xff]  ;;  %v254_v34 = vld [vmem:[%s4781_s22 + $0x58] sm:$0xff]  ;;  %v2421_v36 = vsel %vm2371_vm0, %v4205_v29, 0  ;;  %v280_v29 = vld [vmem:[%s4781_s22 + $0x128] sm:$0xff] }
  0xe2   : > { %v3922_v37 = vcombine.high %v253_v32, %v277_v33  ;;  %v3924_v39 = vcombine.high %v254_v34, %v278_v35 }
  0xe4   : > { %2775 = vmatpush1.bf16.msra.mxu0 %v2409_v42  ;;  %2816 = vmatpush1.bf16.msra.mxu1 %v2415_v44  ;;  %v302_v42 = vld [vmem:[%s4781_s22 + $0x1d8] sm:$0xff]  ;;  %v3921_v44 = vcombine.low %v253_v32, %v277_v33  ;;  %v2439_v32 = vsel %vm2371_vm0, %v4211_v25, 0 }
  0xe5   : > { %2844 = vmatprep.subr.bf16.mxu0 %v3918_v43  ;;  %2885 = vmatprep.subr.bf16.mxu1 %v3920_v45  ;;  %v326_v43 = vld [vmem:[%s4781_s22 + $0x298] sm:$0xff]  ;;  %v3923_v45 = vcombine.low %v254_v34, %v278_v35  ;;  %v303_v34 = vld [vmem:[%s4781_s22 + $0x1e0] sm:$0xff] }
  0xe6   : > { %v3972_v47 = vcombine.high %v302_v42, %v326_v43  ;;  %v327_v35 = vld [vmem:[%s4781_s22 + $0x2a0] sm:$0xff] }
  0xe7   : > { %4250 = vmatmul.mubr.msk.bf16.vlgmr.msra.gmra.mrb[12].mxu0 %vm2367_vm1, %v4825_v3  ;;  %4252 = vmatmul.mubr.msk.bf16.vlgmr.msra.gmra.mrb[12].mxu1 %vm2367_vm1, %v4825_v3 }
  0xe8   : > { %2845 = vmatpush1.bf16.msra.mxu0 %v3917_v50  ;;  %2886 = vmatpush1.bf16.msra.mxu1 %v3919_v51  ;;  %v350_v50 = vld [vmem:[%s4781_s22 + $0x358] sm:$0xff] }
  0xe9   : > { %2846 = vmatprep.subr.bf16.mxu0 %v3966_v52  ;;  %2887 = vmatprep.subr.bf16.mxu1 %v3968_v53  ;;  %v374_v51 = vld [vmem:[%s4781_s22 + $0x418] sm:$0xff]  ;;  %v3969_v52 = vcombine.low %v301_v40, %v325_v41  ;;  %v3971_v53 = vcombine.low %v302_v42, %v326_v43  ;;  %v3974_v40 = vcombine.high %v303_v34, %v327_v35  ;;  %v351_v42 = vld [vmem:[%s4781_s22 + $0x360] sm:$0xff] }
  0xea   : > { %2876 = vmatprep.mubr.bf16.mxu0 %v4577_v0  ;;  %2917 = vmatprep.mubr.bf16.mxu1 %v4577_v0  ;;  %v4020_v55 = vcombine.high %v350_v50, %v374_v51  ;;  %v375_v43 = vld [vmem:[%s4781_s22 + $0x420] sm:$0xff] }
  0xec   : > { %2847 = vmatpush1.bf16.msra.mxu0 %v3965_v58  ;;  %2888 = vmatpush1.bf16.msra.mxu1 %v3967_v59  ;;  %v398_v58 = vld [vmem:[%s4781_s22 + $0x4d8] sm:$0xff] }
  0xed   : > { %2848 = vmatprep.subr.bf16.mxu0 %v4014_v60  ;;  %2889 = vmatprep.subr.bf16.mxu1 %v4016_v61  ;;  %v422_v59 = vld [vmem:[%s4781_s22 + $0x598] sm:$0xff]  ;;  %v4017_v60 = vcombine.low %v349_v48, %v373_v49  ;;  %v4019_v61 = vcombine.low %v350_v50, %v374_v51  ;;  %v4022_v48 = vcombine.high %v351_v42, %v375_v43  ;;  %v399_v50 = vld [vmem:[%s4781_s22 + $0x4e0] sm:$0xff] }
  0xee   : > { %v4068_v63 = vcombine.high %v398_v58, %v422_v59  ;;  %v423_v51 = vld [vmem:[%s4781_s22 + $0x5a0] sm:$0xff] }
  0xf0   : > { %2849 = vmatpush1.bf16.msra.mxu0 %v4013_v4  ;;  %2890 = vmatpush1.bf16.msra.mxu1 %v4015_v5  ;;  %v446_v4 = vld [vmem:[%s4781_s22 + $0x658] sm:$0xff] }
  0xf1   : > { %2850 = vmatprep.subr.bf16.mxu0 %v4062_v6  ;;  %2891 = vmatprep.subr.bf16.mxu1 %v4064_v7  ;;  %v470_v5 = vld [vmem:[%s4781_s22 + $0x718] sm:$0xff]  ;;  %v4065_v6 = vcombine.low %v397_v56, %v421_v57  ;;  %v4067_v7 = vcombine.low %v398_v58, %v422_v59  ;;  %v4070_v56 = vcombine.high %v399_v50, %v423_v51  ;;  %v447_v58 = vld [vmem:[%s4781_s22 + $0x660] sm:$0xff] }
  0xf2   : > { %v4116_v9 = vcombine.high %v446_v4, %v470_v5  ;;  %v471_v59 = vld [vmem:[%s4781_s22 + $0x720] sm:$0xff] }
  0xf4   : > { %2851 = vmatpush1.bf16.msra.mxu0 %v4061_v12  ;;  %2892 = vmatpush1.bf16.msra.mxu1 %v4063_v13  ;;  %v494_v12 = vld [vmem:[%s4781_s22 + $0x7d8] sm:$0xff] }
  0xf5   : > { %2852 = vmatprep.subr.bf16.mxu0 %v4110_v14  ;;  %2893 = vmatprep.subr.bf16.mxu1 %v4112_v15  ;;  %v518_v13 = vld [vmem:[%s4781_s22 + $0x898] sm:$0xff]  ;;  %v4113_v14 = vcombine.low %v445_v1, %v469_v2  ;;  %v4115_v15 = vcombine.low %v446_v4, %v470_v5  ;;  %v4118_v1 = vcombine.high %v447_v58, %v471_v59  ;;  %v495_v4 = vld [vmem:[%s4781_s22 + $0x7e0] sm:$0xff] }
  0xf6   : > { %v4164_v17 = vcombine.high %v494_v12, %v518_v13  ;;  %v519_v5 = vld [vmem:[%s4781_s22 + $0x8a0] sm:$0xff] }
  0xf8   : > { %2853 = vmatpush1.bf16.msra.mxu0 %v4109_v20  ;;  %2894 = vmatpush1.bf16.msra.mxu1 %v4111_v21  ;;  %v4161_v20 = vcombine.low %v493_v10, %v517_v11  ;;  %v4163_v21 = vcombine.low %v494_v12, %v518_v13  ;;  %v4166_v10 = vcombine.high %v495_v4, %v519_v5  ;;  %v543_v12 = vld [vmem:[%s4781_s22 + $0x960] sm:$0x33]  ;;  %v544_v13 = vld [vmem:[%s4781_s22 + $0x968] sm:$0x33] }
  0xf9   : > { %2854 = vmatprep.subr.bf16.mxu0 %v4158_v22  ;;  %2895 = vmatprep.subr.bf16.mxu1 %v4160_v23  ;;  %v4210_v22 = vcombine.high %v541_v18, %v541_v18  ;;  %v4209_v23 = vcombine.low %v541_v18, %v541_v18  ;;  %v4216_v18 = vcombine.high %v544_v13, %v544_v13 }
  0xfa   : > { %v4215_v19 = vcombine.low %v544_v13, %v544_v13 }
  0xfc   : > { %2855 = vmatpush1.bf16.msra.mxu0 %v4157_v26  ;;  %2896 = vmatpush1.bf16.msra.mxu1 %v4159_v27  ;;  %v255_v26 = vld [vmem:[%s4781_s22 + $0x60] sm:$0xff] }
  0xfd   : > { %4253 = vmatprep.subr.msk.bf16.mxu0 %vm2371_vm0, %v4206_v28  ;;  %4255 = vmatprep.subr.msk.bf16.mxu1 %vm2371_vm0, %v4208_v30  ;;  %v279_v27 = vld [vmem:[%s4781_s22 + $0x120] sm:$0xff]  ;;  %v256_v28 = vld [vmem:[%s4781_s22 + $0x68] sm:$0xff]  ;;  %v2433_v30 = vsel %vm2371_vm0, %v4209_v23, 0  ;;  %v282_v23 = vld [vmem:[%s4781_s22 + $0x138] sm:$0xff] }
  0xfe   : > { %v3926_v31 = vcombine.high %v255_v26, %v279_v27  ;;  %v3928_v33 = vcombine.high %v256_v28, %v280_v29 }
 0x100   : > { %2857 = vmatpush1.bf16.msra.mxu0 %v2421_v36  ;;  %2898 = vmatpush1.bf16.msra.mxu1 %v2427_v38  ;;  %v304_v36 = vld [vmem:[%s4781_s22 + $0x1e8] sm:$0xff]  ;;  %v3925_v38 = vcombine.low %v255_v26, %v279_v27  ;;  %v2451_v26 = vsel %vm2371_vm0, %v4215_v19, 0 }
 0x101   : > { %2926 = vmatprep.subr.bf16.mxu0 %v3922_v37  ;;  %2967 = vmatprep.subr.bf16.mxu1 %v3924_v39  ;;  %v328_v37 = vld [vmem:[%s4781_s22 + $0x2a8] sm:$0xff]  ;;  %v3927_v39 = vcombine.low %v256_v28, %v280_v29  ;;  %v305_v28 = vld [vmem:[%s4781_s22 + $0x1f0] sm:$0xff] }
 0x102   : > { %v3976_v41 = vcombine.high %v304_v36, %v328_v37  ;;  %v329_v29 = vld [vmem:[%s4781_s22 + $0x2b0] sm:$0xff] }
 0x103   : > { %4254 = vmatmul.mubr.msk.bf16.vlgmr.msra.gmra.mrb[16].mxu0 %vm2367_vm1, %v4825_v3  ;;  %4256 = vmatmul.mubr.msk.bf16.vlgmr.msra.gmra.mrb[16].mxu1 %vm2367_vm1, %v4825_v3 }
 0x104   : > { %2927 = vmatpush1.bf16.msra.mxu0 %v3921_v44  ;;  %2968 = vmatpush1.bf16.msra.mxu1 %v3923_v45  ;;  %v352_v44 = vld [vmem:[%s4781_s22 + $0x368] sm:$0xff] }
 0x105   : > { %2928 = vmatprep.subr.bf16.mxu0 %v3970_v46  ;;  %2969 = vmatprep.subr.bf16.mxu1 %v3972_v47  ;;  %v376_v45 = vld [vmem:[%s4781_s22 + $0x428] sm:$0xff]  ;;  %v3973_v46 = vcombine.low %v303_v34, %v327_v35  ;;  %v3975_v47 = vcombine.low %v304_v36, %v328_v37  ;;  %v3978_v34 = vcombine.high %v305_v28, %v329_v29  ;;  %v353_v36 = vld [vmem:[%s4781_s22 + $0x370] sm:$0xff] }
 0x106   : > { %2958 = vmatprep.mubr.bf16.mxu0 %v4577_v0  ;;  %2999 = vmatprep.mubr.bf16.mxu1 %v4577_v0  ;;  %v4024_v49 = vcombine.high %v352_v44, %v376_v45  ;;  %v377_v37 = vld [vmem:[%s4781_s22 + $0x430] sm:$0xff] }
 0x108   : > { %2929 = vmatpush1.bf16.msra.mxu0 %v3969_v52  ;;  %2970 = vmatpush1.bf16.msra.mxu1 %v3971_v53  ;;  %v400_v52 = vld [vmem:[%s4781_s22 + $0x4e8] sm:$0xff] }
 0x109   : > { %2930 = vmatprep.subr.bf16.mxu0 %v4018_v54  ;;  %2971 = vmatprep.subr.bf16.mxu1 %v4020_v55  ;;  %v424_v53 = vld [vmem:[%s4781_s22 + $0x5a8] sm:$0xff]  ;;  %v4021_v54 = vcombine.low %v351_v42, %v375_v43  ;;  %v4023_v55 = vcombine.low %v352_v44, %v376_v45  ;;  %v4026_v42 = vcombine.high %v353_v36, %v377_v37  ;;  %v401_v44 = vld [vmem:[%s4781_s22 + $0x4f0] sm:$0xff] }
 0x10a   : > { %v4072_v57 = vcombine.high %v400_v52, %v424_v53  ;;  %v425_v45 = vld [vmem:[%s4781_s22 + $0x5b0] sm:$0xff] }
 0x10c   : > { %2931 = vmatpush1.bf16.msra.mxu0 %v4017_v60  ;;  %2972 = vmatpush1.bf16.msra.mxu1 %v4019_v61  ;;  %v448_v60 = vld [vmem:[%s4781_s22 + $0x668] sm:$0xff] }
 0x10d   : > { %2932 = vmatprep.subr.bf16.mxu0 %v4066_v62  ;;  %2973 = vmatprep.subr.bf16.mxu1 %v4068_v63  ;;  %v472_v61 = vld [vmem:[%s4781_s22 + $0x728] sm:$0xff]  ;;  %v4069_v62 = vcombine.low %v399_v50, %v423_v51  ;;  %v4071_v63 = vcombine.low %v400_v52, %v424_v53  ;;  %v4074_v50 = vcombine.high %v401_v44, %v425_v45  ;;  %v449_v52 = vld [vmem:[%s4781_s22 + $0x670] sm:$0xff] }
 0x10e   : > { %v4120_v2 = vcombine.high %v448_v60, %v472_v61  ;;  %v473_v53 = vld [vmem:[%s4781_s22 + $0x730] sm:$0xff] }
 0x110   : > { %2933 = vmatpush1.bf16.msra.mxu0 %v4065_v6  ;;  %2974 = vmatpush1.bf16.msra.mxu1 %v4067_v7  ;;  %v496_v6 = vld [vmem:[%s4781_s22 + $0x7e8] sm:$0xff] }
 0x111   : > { %2934 = vmatprep.subr.bf16.mxu0 %v4114_v8  ;;  %2975 = vmatprep.subr.bf16.mxu1 %v4116_v9  ;;  %v520_v7 = vld [vmem:[%s4781_s22 + $0x8a8] sm:$0xff]  ;;  %v4117_v8 = vcombine.low %v447_v58, %v471_v59  ;;  %v4119_v9 = vcombine.low %v448_v60, %v472_v61  ;;  %v4122_v58 = vcombine.high %v449_v52, %v473_v53  ;;  %v497_v60 = vld [vmem:[%s4781_s22 + $0x7f0] sm:$0xff] }
 0x112   : > { %v4168_v11 = vcombine.high %v496_v6, %v520_v7  ;;  %v521_v61 = vld [vmem:[%s4781_s22 + $0x8b0] sm:$0xff] }
 0x114   : > { %2935 = vmatpush1.bf16.msra.mxu0 %v4113_v14  ;;  %2976 = vmatpush1.bf16.msra.mxu1 %v4115_v15  ;;  %v4165_v14 = vcombine.low %v495_v4, %v519_v5  ;;  %v4167_v15 = vcombine.low %v496_v6, %v520_v7  ;;  %v4170_v4 = vcombine.high %v497_v60, %v521_v61  ;;  %v545_v6 = vld [vmem:[%s4781_s22 + $0x970] sm:$0x33]  ;;  %v546_v7 = vld [vmem:[%s4781_s22 + $0x978] sm:$0x33] }
 0x115   : > { %2936 = vmatprep.subr.bf16.mxu0 %v4162_v16  ;;  %2977 = vmatprep.subr.bf16.mxu1 %v4164_v17  ;;  %v4214_v16 = vcombine.high %v543_v12, %v543_v12  ;;  %v4213_v17 = vcombine.low %v543_v12, %v543_v12  ;;  %v4220_v12 = vcombine.high %v546_v7, %v546_v7 }
 0x116   : > { %v4219_v13 = vcombine.low %v546_v7, %v546_v7 }
 0x118   : > { %2937 = vmatpush1.bf16.msra.mxu0 %v4161_v20  ;;  %2978 = vmatpush1.bf16.msra.mxu1 %v4163_v21  ;;  %v257_v20 = vld [vmem:[%s4781_s22 + $0x70] sm:$0xff] }
 0x119   : > { %4257 = vmatprep.subr.msk.bf16.mxu0 %vm2371_vm0, %v4210_v22  ;;  %4259 = vmatprep.subr.msk.bf16.mxu1 %vm2371_vm0, %v4212_v24  ;;  %v281_v21 = vld [vmem:[%s4781_s22 + $0x130] sm:$0xff]  ;;  %v258_v22 = vld [vmem:[%s4781_s22 + $0x78] sm:$0xff]  ;;  %v2445_v24 = vsel %vm2371_vm0, %v4213_v17, 0  ;;  %v284_v17 = vld [vmem:[%s4781_s22 + $0x148] sm:$0xff] }
 0x11a   : > { %v3930_v25 = vcombine.high %v257_v20, %v281_v21  ;;  %v3932_v27 = vcombine.high %v258_v22, %v282_v23 }
 0x11c   : > { %2939 = vmatpush1.bf16.msra.mxu0 %v2433_v30  ;;  %2980 = vmatpush1.bf16.msra.mxu1 %v2439_v32  ;;  %v306_v30 = vld [vmem:[%s4781_s22 + $0x1f8] sm:$0xff]  ;;  %v3929_v32 = vcombine.low %v257_v20, %v281_v21  ;;  %v2463_v20 = vsel %vm2371_vm0, %v4219_v13, 0 }
 0x11d   : > { %3008 = vmatprep.subr.bf16.mxu0 %v3926_v31  ;;  %3049 = vmatprep.subr.bf16.mxu1 %v3928_v33  ;;  %v330_v31 = vld [vmem:[%s4781_s22 + $0x2b8] sm:$0xff]  ;;  %v3931_v33 = vcombine.low %v258_v22, %v282_v23  ;;  %v307_v22 = vld [vmem:[%s4781_s22 + $0x200] sm:$0xff] }
 0x11e   : > { %v3980_v35 = vcombine.high %v306_v30, %v330_v31  ;;  %v331_v23 = vld [vmem:[%s4781_s22 + $0x2c0] sm:$0xff] }
 0x11f   : > { %4258 = vmatmul.mubr.msk.bf16.vlgmr.msra.gmra.mrb[20].mxu0 %vm2367_vm1, %v4825_v3  ;;  %4260 = vmatmul.mubr.msk.bf16.vlgmr.msra.gmra.mrb[20].mxu1 %vm2367_vm1, %v4825_v3 }
 0x120   : > { %3009 = vmatpush1.bf16.msra.mxu0 %v3925_v38  ;;  %3050 = vmatpush1.bf16.msra.mxu1 %v3927_v39  ;;  %v354_v38 = vld [vmem:[%s4781_s22 + $0x378] sm:$0xff] }
 0x121   : > { %3010 = vmatprep.subr.bf16.mxu0 %v3974_v40  ;;  %3051 = vmatprep.subr.bf16.mxu1 %v3976_v41  ;;  %v378_v39 = vld [vmem:[%s4781_s22 + $0x438] sm:$0xff]  ;;  %v3977_v40 = vcombine.low %v305_v28, %v329_v29  ;;  %v3979_v41 = vcombine.low %v306_v30, %v330_v31  ;;  %v3982_v28 = vcombine.high %v307_v22, %v331_v23  ;;  %v355_v30 = vld [vmem:[%s4781_s22 + $0x380] sm:$0xff] }
 0x122   : > { %3040 = vmatprep.mubr.bf16.mxu0 %v4577_v0  ;;  %3081 = vmatprep.mubr.bf16.mxu1 %v4577_v0  ;;  %v4028_v43 = vcombine.high %v354_v38, %v378_v39  ;;  %v379_v31 = vld [vmem:[%s4781_s22 + $0x440] sm:$0xff] }
 0x124   : > { %3011 = vmatpush1.bf16.msra.mxu0 %v3973_v46  ;;  %3052 = vmatpush1.bf16.msra.mxu1 %v3975_v47  ;;  %v402_v46 = vld [vmem:[%s4781_s22 + $0x4f8] sm:$0xff] }
 0x125   : > { %3012 = vmatprep.subr.bf16.mxu0 %v4022_v48  ;;  %3053 = vmatprep.subr.bf16.mxu1 %v4024_v49  ;;  %v426_v47 = vld [vmem:[%s4781_s22 + $0x5b8] sm:$0xff]  ;;  %v4025_v48 = vcombine.low %v353_v36, %v377_v37  ;;  %v4027_v49 = vcombine.low %v354_v38, %v378_v39  ;;  %v4030_v37 = vcombine.high %v355_v30, %v379_v31  ;;  %v403_v39 = vld [vmem:[%s4781_s22 + $0x500] sm:$0xff] }
 0x126   : > { %v4076_v51 = vcombine.high %v402_v46, %v426_v47 }
 0x128   : > { %3013 = vmatpush1.bf16.msra.mxu0 %v4021_v54  ;;  %3054 = vmatpush1.bf16.msra.mxu1 %v4023_v55  ;;  %v450_v54 = vld [vmem:[%s4781_s22 + $0x678] sm:$0xff] }
 0x129   : > { %3014 = vmatprep.subr.bf16.mxu0 %v4070_v56  ;;  %3055 = vmatprep.subr.bf16.mxu1 %v4072_v57  ;;  %v474_v55 = vld [vmem:[%s4781_s22 + $0x738] sm:$0xff]  ;;  %v4073_v56 = vcombine.low %v401_v44, %v425_v45  ;;  %v4075_v57 = vcombine.low %v402_v46, %v426_v47  ;;  %v4029_v44 = vcombine.low %v355_v30, %v379_v31 }
 0x12a   : > { %v4124_v59 = vcombine.high %v450_v54, %v474_v55 }
 0x12c   : > { %3015 = vmatpush1.bf16.msra.mxu0 %v4069_v62  ;;  %3056 = vmatpush1.bf16.msra.mxu1 %v4071_v63  ;;  %v498_v62 = vld [vmem:[%s4781_s22 + $0x7f8] sm:$0xff] }
 0x12d   : > { %3016 = vmatprep.subr.bf16.mxu0 %v4118_v1  ;;  %3057 = vmatprep.subr.bf16.mxu1 %v4120_v2  ;;  %v522_v63 = vld [vmem:[%s4781_s22 + $0x8b8] sm:$0xff]  ;;  %v4121_v1 = vcombine.low %v449_v52, %v473_v53  ;;  %v4123_v2 = vcombine.low %v450_v54, %v474_v55  ;;  %v452_v53 = vld [vmem:[%s4781_s22 + $0x688] sm:$0xff] }
 0x12e   : > { %v4172_v5 = vcombine.high %v498_v62, %v522_v63  ;;  %v476_v54 = vld [vmem:[%s4781_s22 + $0x748] sm:$0xff] }
 0x130   : > { %3017 = vmatpush1.bf16.msra.mxu0 %v4117_v8  ;;  %3058 = vmatpush1.bf16.msra.mxu1 %v4119_v9  ;;  %v4169_v8 = vcombine.low %v497_v60, %v521_v61  ;;  %v4171_v9 = vcombine.low %v498_v62, %v522_v63  ;;  %v4128_v62 = vcombine.high %v452_v53, %v476_v54  ;;  %v499_v63 = vld [vmem:[%s4781_s22 + $0x800] sm:$0xff] }
 0x131   : > { %3018 = vmatprep.subr.bf16.mxu0 %v4166_v10  ;;  %3059 = vmatprep.subr.bf16.mxu1 %v4168_v11  ;;  %v4218_v10 = vcombine.high %v545_v6, %v545_v6  ;;  %v4217_v11 = vcombine.low %v545_v6, %v545_v6  ;;  %v524_v6 = vld [vmem:[%s4781_s22 + $0x8c8] sm:$0xff] }
 0x134   : > { %3019 = vmatpush1.bf16.msra.mxu0 %v4165_v14  ;;  %3060 = vmatpush1.bf16.msra.mxu1 %v4167_v15  ;;  %v259_v14 = vld [vmem:[%s4781_s22 + $0x80] sm:$0xff] }
 0x135   : > { %4261 = vmatprep.subr.msk.bf16.mxu0 %vm2371_vm0, %v4214_v16  ;;  %4263 = vmatprep.subr.msk.bf16.mxu1 %vm2371_vm0, %v4216_v18  ;;  %v283_v15 = vld [vmem:[%s4781_s22 + $0x140] sm:$0xff]  ;;  %v260_v16 = vld [vmem:[%s4781_s22 + $0x88] sm:$0xff]  ;;  %v2457_v18 = vsel %vm2371_vm0, %v4217_v11, 0  ;;  %v4127_v11 = vcombine.low %v452_v53, %v476_v54  ;;  %v334_v53 = vld [vmem:[%s4781_s22 + $0x2d8] sm:$0xff] }
 0x136   : > { %v3934_v19 = vcombine.high %v259_v14, %v283_v15  ;;  %v3936_v21 = vcombine.high %v260_v16, %v284_v17 }
 0x138   : > { %3021 = vmatpush1.bf16.msra.mxu0 %v2445_v24  ;;  %3062 = vmatpush1.bf16.msra.mxu1 %v2451_v26  ;;  %v308_v24 = vld [vmem:[%s4781_s22 + $0x208] sm:$0xff]  ;;  %v3933_v26 = vcombine.low %v259_v14, %v283_v15  ;;  %v547_v15 = vld [vmem:[%s4781_s22 + $0x980] sm:$0x33] }
 0x139   : > { %3090 = vmatprep.subr.bf16.mxu0 %v3930_v25  ;;  %3131 = vmatprep.subr.bf16.mxu1 %v3932_v27  ;;  %v332_v25 = vld [vmem:[%s4781_s22 + $0x2c8] sm:$0xff]  ;;  %v3935_v27 = vcombine.low %v260_v16, %v284_v17  ;;  %v4222_v30 = vcombine.high %v547_v15, %v547_v15  ;;  %v4221_v31 = vcombine.low %v547_v15, %v547_v15 }
 0x13a   : > { %v3984_v29 = vcombine.high %v308_v24, %v332_v25  ;;  %v3983_v36 = vcombine.low %v308_v24, %v332_v25 }
 0x13b   : > { %4262 = vmatmul.mubr.msk.bf16.vlgmr.msra.gmra.mrb[24].mxu0 %vm2367_vm1, %v4825_v3  ;;  %4264 = vmatmul.mubr.msk.bf16.vlgmr.msra.gmra.mrb[24].mxu1 %vm2367_vm1, %v4825_v3 }
 0x13c   : > { %3091 = vmatpush1.bf16.msra.mxu0 %v3929_v32  ;;  %3132 = vmatpush1.bf16.msra.mxu1 %v3931_v33  ;;  %v356_v32 = vld [vmem:[%s4781_s22 + $0x388] sm:$0xff] }
 0x13d   : > { %3092 = vmatprep.subr.bf16.mxu0 %v3978_v34  ;;  %3133 = vmatprep.subr.bf16.mxu1 %v3980_v35  ;;  %v380_v33 = vld [vmem:[%s4781_s22 + $0x448] sm:$0xff]  ;;  %v567_v34 = vlaneseq  ;;  %v3981_v35 = vcombine.low %v307_v22, %v331_v23 }
 0x13e   : > { %3122 = vmatprep.mubr.bf16.mxu0 %v4577_v0  ;;  %3163 = vmatprep.mubr.bf16.mxu1 %v4577_v0  ;;  %v4032_v38 = vcombine.high %v356_v32, %v380_v33  ;;  %v4031_v45 = vcombine.low %v356_v32, %v380_v33 }
 0x140   : > { %3093 = vmatpush1.bf16.msra.mxu0 %v3977_v40  ;;  %3134 = vmatpush1.bf16.msra.mxu1 %v3979_v41  ;;  %v427_v40 = vld [vmem:[%s4781_s22 + $0x5c0] sm:$0xff]  ;;  %v404_v41 = vld [vmem:[%s4781_s22 + $0x508] sm:$0xff] }
 0x141   : > { %3094 = vmatprep.subr.bf16.mxu0 %v4026_v42  ;;  %3135 = vmatprep.subr.bf16.mxu1 %v4028_v43  ;;  %v428_v42 = vld [vmem:[%s4781_s22 + $0x5c8] sm:$0xff]  ;;  %v5095_v43 = vshrl.u32 %v567_v34, 7  ;;  %v4078_v46 = vcombine.high %v403_v39, %v427_v40  ;;  %v4077_v55 = vcombine.low %v403_v39, %v427_v40  ;;  %v262_v39 = vld [vmem:[%s4781_s22 + $0x98] sm:$0xff] }
 0x142   : > { %v4080_v47 = vcombine.high %v404_v41, %v428_v42  ;;  %v286_v40 = vld [vmem:[%s4781_s22 + $0x158] sm:$0xff] }
 0x143   : > { %v5117_v60 = vsub.s32 3, %v5095_v43 }
 0x144   : > { %3095 = vmatpush1.bf16.msra.mxu0 %v4025_v48  ;;  %3136 = vmatpush1.bf16.msra.mxu1 %v4027_v49  ;;  %v451_v48 = vld [vmem:[%s4781_s22 + $0x680] sm:$0xff] }
 0x145   : > { %3096 = vmatprep.subr.bf16.mxu0 %v4074_v50  ;;  %3137 = vmatprep.subr.bf16.mxu1 %v4076_v51  ;;  %v475_v49 = vld [vmem:[%s4781_s22 + $0x740] sm:$0xff]  ;;  %v5101_v50 = vsub.s32 0, %v5095_v43  ;;  %v4578_v51 = vmov 1983009808  }
 0x146   : > { %v3551_v52 = vunpack.c.l.s4 %v4578_v51  ;;  %v4126_v61 = vcombine.high %v451_v48, %v475_v49 }
 0x148   : > { %3097 = vmatpush1.bf16.msra.mxu0 %v4073_v56  ;;  %3138 = vmatpush1.bf16.msra.mxu1 %v4075_v57  ;;  %v5108_v56 = vld [vmem:[%s5105_s28] sm:$0xff]  ;;  %v5111_v57 = vsub.s32 2, %v5095_v43 }
 0x149   : > { %3098 = vmatprep.subr.bf16.mxu0 %v4122_v58  ;;  %3139 = vmatprep.subr.bf16.mxu1 %v4124_v59  ;;  %v5114_v58 = vsub.s32 1, %v5095_v43  ;;  %v4079_v59 = vcombine.low %v404_v41, %v428_v42 }
 0x14a   : > { %v578_v7 = vrot.slane %v5108_v56, %v5111_v57 }
 0x14c   : > { %3099 = vmatpush1.bf16.msra.mxu0 %v4121_v1  ;;  %3140 = vmatpush1.bf16.msra.mxu1 %v4123_v2  ;;  %v523_v1 = vld [vmem:[%s4781_s22 + $0x8c0] sm:$0xff]  ;;  %v570_v2 = vrot.slane %v5108_v56, %v5101_v50 }
 0x14d   : > { %3100 = vmatprep.subr.bf16.mxu0 %v4170_v4  ;;  %3141 = vmatprep.subr.bf16.mxu1 %v4172_v5  ;;  %v3552_v4 = vunpack.c.0.s8 %v3551_v52  ;;  %v500_v5 = vld [vmem:[%s4781_s22 + $0x808] sm:$0xff]  ;;  %v4173_v25 = vcombine.low %v499_v63, %v523_v1  ;;  %v310_v52 = vld [vmem:[%s4781_s22 + $0x218] sm:$0xff] }
 0x14e   : > { %v4176_v14 = vcombine.high %v500_v5, %v524_v6 }
 0x150   : > { %3101 = vmatpush1.bf16.msra.mxu0 %v4169_v8  ;;  %3142 = vmatpush1.bf16.msra.mxu1 %v4171_v9  ;;  %v574_v8 = vrot.slane %v5108_v56, %v5114_v58  ;;  %v4125_v9 = vcombine.low %v451_v48, %v475_v49  ;;  %v309_v48 = vld [vmem:[%s4781_s22 + $0x210] sm:$0xff] }
 0x151   : > { %4265 = vmatprep.subr.msk.bf16.mxu0 %vm2371_vm0, %v4218_v10  ;;  %4267 = vmatprep.subr.msk.bf16.mxu1 %vm2371_vm0, %v4220_v12  ;;  %v582_v10 = vrot.slane %v5108_v56, %v5117_v60  ;;  %v4174_v12 = vcombine.high %v499_v63, %v523_v1  ;;  %v333_v49 = vld [vmem:[%s4781_s22 + $0x2d0] sm:$0xff]  ;;  %v358_v1 = vld [vmem:[%s4781_s22 + $0x398] sm:$0xff] }
 0x152   : > { %v381_v63 = vld [vmem:[%s4781_s22 + $0x450] sm:$0xff] }
 0x154   : > { %3103 = vmatpush1.bf16.msra.mxu0 %v2457_v18  ;;  %3144 = vmatpush1.bf16.msra.mxu1 %v2463_v20  ;;  %v548_v20 = vld [vmem:[%s4781_s22 + $0x988] sm:$0x33] }
 0x155   : > { %3172 = vmatprep.subr.bf16.mxu0 %v3934_v19  ;;  %3213 = vmatprep.subr.bf16.mxu1 %v3936_v21  ;;  %v5133_v19 = vsub.s32 %v3552_v4, %v5095_v43  ;;  %v4224_v34 = vcombine.high %v548_v20, %v548_v20  ;;  %v3985_v4 = vcombine.low %v309_v48, %v333_v49 }
 0x157   : > { %4266 = vmatmul.mubr.msk.bf16.vlgmr.msra.gmra.mrb[28].mxu0 %vm2367_vm1, %v4825_v3  ;;  %4268 = vmatmul.mubr.msk.bf16.vlgmr.msra.gmra.mrb[28].mxu1 %vm2367_vm1, %v4825_v3 }
 0x158   : > { %3173 = vmatpush1.bf16.msra.mxu0 %v3933_v26  ;;  %3214 = vmatpush1.bf16.msra.mxu1 %v3935_v27  ;;  %v4175_v26 = vcombine.low %v500_v5, %v524_v6  ;;  %v3987_v5 = vcombine.low %v310_v52, %v334_v53 }
 0x159   : > { %3174 = vmatprep.subr.bf16.mxu0 %v3982_v28  ;;  %3215 = vmatprep.subr.bf16.mxu1 %v3984_v29 }
 0x15a   : > { %3204 = vmatprep.mubr.bf16.mxu0 %v4577_v0  ;;  %3245 = vmatprep.mubr.bf16.mxu1 %v4577_v0 }
 0x15c   : > { %3175 = vmatpush1.bf16.msra.mxu0 %v3981_v35  ;;  %3216 = vmatpush1.bf16.msra.mxu1 %v3983_v36  ;;  %v4223_v35 = vcombine.low %v548_v20, %v548_v20  ;;  %v261_v36 = vld [vmem:[%s4781_s22 + $0x90] sm:$0xff]  ;;  %v454_v20 = vld [vmem:[%s4781_s22 + $0x698] sm:$0xff] }
 0x15d   : > { %3176 = vmatprep.subr.bf16.mxu0 %v4030_v37  ;;  %3217 = vmatprep.subr.bf16.mxu1 %v4032_v38  ;;  %v285_v37 = vld [vmem:[%s4781_s22 + $0x150] sm:$0xff] }
 0x15e   : > { %v3937_v54 = vcombine.low %v261_v36, %v285_v37 }
 0x160   : > { %3177 = vmatpush1.bf16.msra.mxu0 %v4029_v44  ;;  %3218 = vmatpush1.bf16.msra.mxu1 %v4031_v45  ;;  %v2469_v44 = vsel %vm2371_vm0, %v4221_v31, 0  ;;  %v3938_v45 = vcombine.high %v261_v36, %v285_v37 }
 0x161   : > { %3178 = vmatprep.subr.bf16.mxu0 %v4078_v46  ;;  %3219 = vmatprep.subr.bf16.mxu1 %v4080_v47  ;;  %v2475_v46 = vsel %vm2371_vm0, %v4223_v35, 0  ;;  %v3940_v47 = vcombine.high %v262_v39, %v286_v40 }
 0x164   : > { %3179 = vmatpush1.bf16.msra.mxu0 %v4077_v55  ;;  %3220 = vmatpush1.bf16.msra.mxu1 %v4079_v59  ;;  %v3939_v55 = vcombine.low %v262_v39, %v286_v40  ;;  %v3986_v59 = vcombine.high %v309_v48, %v333_v49 }
 0x165   : > { %3180 = vmatprep.subr.bf16.mxu0 %v4126_v61  ;;  %3221 = vmatprep.subr.bf16.mxu1 %v4128_v62  ;;  %v3988_v61 = vcombine.high %v310_v52, %v334_v53  ;;  %v357_v62 = vld [vmem:[%s4781_s22 + $0x390] sm:$0xff] }
 0x166   : > { %v2550_v13 = vpop.f32.mrb[0].mxu0  ;;  %v2591_v17 = vpop.f32.mrb[0].mxu1  ;;  %v4034_v6 = vcombine.high %v357_v62, %v381_v63 }
 0x167   : > { %v2551_v16 = vadd.f32 %v2550_v13, %v570_v2  ;;  %v2552_v18 = vpop.f32.mrb[1].mxu0  ;;  %v2592_v21 = vadd.f32 %v2591_v17, %v578_v7  ;;  %v2593_v23 = vpop.f32.mrb[1].mxu1  ;;  %v382_v2 = vld [vmem:[%s4781_s22 + $0x458] sm:$0xff]  ;;  %v477_v17 = vld [vmem:[%s4781_s22 + $0x750] sm:$0xff] }
 0x168   : > { %v2553_v22 = vadd.f32 %v2552_v18, %v574_v8  ;;  %v2554_v24 = vpop.f32.mrb[2].mxu0  ;;  %3181 = vmatpush1.bf16.msra.mxu0 %v4125_v9  ;;  %v2594_v27 = vadd.f32 %v2593_v23, %v582_v10  ;;  %v2595_v28 = vpop.f32.mrb[2].mxu1  ;;  %3222 = vmatpush1.bf16.msra.mxu1 %v4127_v11  ;;  %v4036_v7 = vcombine.high %v358_v1, %v382_v2  ;;  %v405_v8 = vld [vmem:[%s4781_s22 + $0x510] sm:$0xff]  ;;  %v406_v10 = vld [vmem:[%s4781_s22 + $0x518] sm:$0xff]  ;;  %v5171_v18 = vsub.s32 4, %v5095_v43 }
 0x169   : > { %v2555_v29 = vpop.f32.mrb[3].mxu0  ;;  %3182 = vmatprep.subr.bf16.mxu0 %v4174_v12  ;;  %v2596_v33 = vpop.f32.mrb[3].mxu1  ;;  %3223 = vmatprep.subr.bf16.mxu1 %v4176_v14  ;;  %v429_v9 = vld [vmem:[%s4781_s22 + $0x5d0] sm:$0xff]  ;;  %v430_v11 = vld [vmem:[%s4781_s22 + $0x5d8] sm:$0xff]  ;;  %v4033_v12 = vcombine.low %v357_v62, %v381_v63  ;;  %v4035_v13 = vcombine.low %v358_v1, %v382_v2  ;;  %v5176_v23 = vsub.s32 6, %v5095_v43  ;;  %v5179_v24 = vsub.s32 5, %v5095_v43 }
 0x16a   : > { %v3548_v32 = vcombine.low %v2551_v16, %v2553_v22  ;;  %v3549_v38 = vcombine.low %v2592_v21, %v2594_v27  ;;  %v4082_v14 = vcombine.high %v405_v8, %v429_v9  ;;  %v4084_v15 = vcombine.high %v406_v10, %v430_v11  ;;  %v453_v16 = vld [vmem:[%s4781_s22 + $0x690] sm:$0xff]  ;;  %v478_v21 = vld [vmem:[%s4781_s22 + $0x758] sm:$0xff] }
 0x16b   : > { %v4081_v22 = vcombine.low %v405_v8, %v429_v9  ;;  %v4130_v27 = vcombine.high %v453_v16, %v477_v17  ;;  %v4132_v28 = vcombine.high %v454_v20, %v478_v21  ;;  %v501_v29 = vld [vmem:[%s4781_s22 + $0x810] sm:$0xff]  ;;  %v586_v31 = vrot.slane %v5108_v56, %v5171_v18  ;;  %v526_v33 = vld [vmem:[%s4781_s22 + $0x8d8] sm:$0xff]  ;;  %v288_v8 = vld [vmem:[%s4781_s22 + $0x168] sm:$0xff] }
 0x16c   : > { %v3556_v41 = vrot.slane %v3548_v32, %v5133_v19  ;;  %3183 = vmatpush1.bf16.msra.mxu0 %v4173_v25  ;;  %v3563_v42 = vrot.slane %v3549_v38, %v5133_v19  ;;  %3224 = vmatpush1.bf16.msra.mxu1 %v4175_v26  ;;  %v4083_v25 = vcombine.low %v406_v10, %v430_v11  ;;  %v5182_v26 = vsub.s32 7, %v5095_v43  ;;  %v502_v32 = vld [vmem:[%s4781_s22 + $0x818] sm:$0xff] }
 0x16d   : > { %4269 = vmatprep.subr.msk.bf16.mxu0 %vm2371_vm0, %v4222_v30  ;;  %4271 = vmatprep.subr.msk.bf16.mxu1 %vm2371_vm0, %v4224_v34  ;;  %v525_v30 = vld [vmem:[%s4781_s22 + $0x8d0] sm:$0xff]  ;;  %v594_v34 = vrot.slane %v5108_v56, %v5176_v23  ;;  %v590_v43 = vrot.slane %v5108_v56, %v5179_v24  ;;  %v4129_v35 = vcombine.low %v453_v16, %v477_v17  ;;  %v335_v16 = vld [vmem:[%s4781_s22 + $0x2e0] sm:$0xff] }
 0x16e   : > { %v3564_v51 = vcombine.low %v3556_v41, %v3563_v42  ;;  %v598_v36 = vrot.slane %v5108_v56, %v5182_v26  ;;  %v4131_v37 = vcombine.low %v454_v20, %v478_v21  ;;  %v4178_v38 = vcombine.high %v501_v29, %v525_v30  ;;  %v549_v41 = vld [vmem:[%s4781_s22 + $0x990] sm:$0x33]  ;;  %v312_v20 = vld [vmem:[%s4781_s22 + $0x228] sm:$0xff] }
 0x16f   : > { %v4180_v40 = vcombine.high %v502_v32, %v526_v33  ;;  %v4177_v52 = vcombine.low %v501_v29, %v525_v30  ;;  %v4179_v56 = vcombine.low %v502_v32, %v526_v33  ;;  %v336_v21 = vld [vmem:[%s4781_s22 + $0x2e8] sm:$0xff]  ;;  %v359_v29 = vld [vmem:[%s4781_s22 + $0x3a0] sm:$0xff] }
 0x170   : > { %3185 = vmatpush1.bf16.msra.mxu0 %v2469_v44  ;;  %3764 = vst [vmem:[%s5151_s17] sm:$0xff] %v3564_v51  ;;  %3226 = vmatpush1.bf16.msra.mxu1 %v2475_v46  ;;  %v550_v46 = vld [vmem:[%s4781_s22 + $0x998] sm:$0x33]  ;;  %v383_v30 = vld [vmem:[%s4781_s22 + $0x460] sm:$0xff]  ;;  %v384_v32 = vld [vmem:[%s4781_s22 + $0x468] sm:$0xff] }
 0x171   : > { %3254 = vmatprep.subr.bf16.mxu0 %v3938_v45  ;;  %3295 = vmatprep.subr.bf16.mxu1 %v3940_v47  ;;  %v4228_v1 = vcombine.high %v550_v46, %v550_v46  ;;  %v4227_v2 = vcombine.low %v550_v46, %v550_v46  ;;  %v479_v46 = vld [vmem:[%s4781_s22 + $0x760] sm:$0xff] }
 0x173   : > { %4270 = vmatmul.mubr.msk.bf16.vlgmr.msra.gmra.mrb[32].mxu0 %vm2367_vm1, %v4825_v3  ;;  %4272 = vmatmul.mubr.msk.bf16.vlgmr.msra.gmra.mrb[32].mxu1 %vm2367_vm1, %v4825_v3 }
 0x174   : > { %3255 = vmatpush1.bf16.msra.mxu0 %v3937_v54  ;;  %3296 = vmatpush1.bf16.msra.mxu1 %v3939_v55 }
 0x175   : > { %3256 = vmatprep.subr.bf16.mxu0 %v3986_v59  ;;  %3297 = vmatprep.subr.bf16.mxu1 %v3988_v61  ;;  %v4226_v59 = vcombine.high %v549_v41, %v549_v41  ;;  %v4225_v61 = vcombine.low %v549_v41, %v549_v41 }
 0x176   : > { %3286 = vmatprep.mubr.bf16.mxu0 %v4577_v0  ;;  %3327 = vmatprep.mubr.bf16.mxu1 %v4577_v0 }
 0x177   : > { %v2481_v11 = vsel %vm2371_vm0, %v4225_v61, 0  ;;  %v504_v61 = vld [vmem:[%s4781_s22 + $0x828] sm:$0xff] }
 0x178   : > { %3257 = vmatpush1.bf16.msra.mxu0 %v3985_v4  ;;  %3298 = vmatpush1.bf16.msra.mxu1 %v3987_v5  ;;  %v263_v4 = vld [vmem:[%s4781_s22 + $0xa0] sm:$0xff] }
 0x179   : > { %3258 = vmatprep.subr.bf16.mxu0 %v4034_v6  ;;  %3299 = vmatprep.subr.bf16.mxu1 %v4036_v7  ;;  %v287_v5 = vld [vmem:[%s4781_s22 + $0x160] sm:$0xff]  ;;  %v264_v7 = vld [vmem:[%s4781_s22 + $0xa8] sm:$0xff] }
 0x17c   : > { %3259 = vmatpush1.bf16.msra.mxu0 %v4033_v12  ;;  %3300 = vmatpush1.bf16.msra.mxu1 %v4035_v13  ;;  %v3942_v12 = vcombine.high %v263_v4, %v287_v5  ;;  %v2487_v13 = vsel %vm2371_vm0, %v4227_v2, 0 }
 0x17d   : > { %3260 = vmatprep.subr.bf16.mxu0 %v4082_v14  ;;  %3301 = vmatprep.subr.bf16.mxu1 %v4084_v15  ;;  %v3944_v14 = vcombine.high %v264_v7, %v288_v8  ;;  %v311_v15 = vld [vmem:[%s4781_s22 + $0x220] sm:$0xff] }
 0x17e   : > { %v3989_v33 = vcombine.low %v311_v15, %v335_v16 }
 0x180   : > { %3261 = vmatpush1.bf16.msra.mxu0 %v4081_v22  ;;  %3302 = vmatpush1.bf16.msra.mxu1 %v4083_v25  ;;  %v3941_v22 = vcombine.low %v263_v4, %v287_v5  ;;  %v3943_v25 = vcombine.low %v264_v7, %v288_v8 }
 0x181   : > { %3262 = vmatprep.subr.bf16.mxu0 %v4130_v27  ;;  %3303 = vmatprep.subr.bf16.mxu1 %v4132_v28  ;;  %v3990_v27 = vcombine.high %v311_v15, %v335_v16  ;;  %v3992_v28 = vcombine.high %v312_v20, %v336_v21 }
 0x182   : > { %v2632_v39 = vpop.f32.mrb[4].mxu0  ;;  %v2673_v44 = vpop.f32.mrb[4].mxu1 }
 0x183   : > { %v2633_v42 = vadd.f32 %v2632_v39, %v586_v31  ;;  %v2634_v45 = vpop.f32.mrb[5].mxu0  ;;  %v2674_v47 = vadd.f32 %v2673_v44, %v594_v34  ;;  %v2675_v49 = vpop.f32.mrb[5].mxu1  ;;  %v360_v31 = vld [vmem:[%s4781_s22 + $0x3a8] sm:$0xff]  ;;  %v3991_v34 = vcombine.low %v312_v20, %v336_v21 }
 0x184   : > { %v2635_v48 = vadd.f32 %v2634_v45, %v590_v43  ;;  %v2636_v51 = vpop.f32.mrb[6].mxu0  ;;  %3263 = vmatpush1.bf16.msra.mxu0 %v4129_v35  ;;  %v2676_v53 = vadd.f32 %v2675_v49, %v598_v36  ;;  %v2677_v54 = vpop.f32.mrb[6].mxu1  ;;  %3304 = vmatpush1.bf16.msra.mxu1 %v4131_v37  ;;  %v4038_v43 = vcombine.high %v359_v29, %v383_v30  ;;  %v407_v36 = vld [vmem:[%s4781_s22 + $0x520] sm:$0xff]  ;;  %v432_v39 = vld [vmem:[%s4781_s22 + $0x5e8] sm:$0xff] }
 0x185   : > { %v2637_v55 = vpop.f32.mrb[7].mxu0  ;;  %3264 = vmatprep.subr.bf16.mxu0 %v4178_v38  ;;  %v2678_v63 = vpop.f32.mrb[7].mxu1  ;;  %3305 = vmatprep.subr.bf16.mxu1 %v4180_v40  ;;  %v4040_v35 = vcombine.high %v360_v31, %v384_v32  ;;  %v431_v37 = vld [vmem:[%s4781_s22 + $0x5e0] sm:$0xff]  ;;  %v408_v38 = vld [vmem:[%s4781_s22 + $0x528] sm:$0xff]  ;;  %v4037_v40 = vcombine.low %v359_v29, %v383_v30  ;;  %v4039_v41 = vcombine.low %v360_v31, %v384_v32 }
 0x186   : > { %v3565_v62 = vcombine.low %v2633_v42, %v2635_v48  ;;  %v3566_v6 = vcombine.low %v2674_v47, %v2676_v53  ;;  %v4086_v42 = vcombine.high %v407_v36, %v431_v37  ;;  %v4088_v44 = vcombine.high %v408_v38, %v432_v39  ;;  %v455_v45 = vld [vmem:[%s4781_s22 + $0x6a0] sm:$0xff]  ;;  %v456_v47 = vld [vmem:[%s4781_s22 + $0x6a8] sm:$0xff] }
 0x187   : > { %v480_v48 = vld [vmem:[%s4781_s22 + $0x768] sm:$0xff]  ;;  %v4085_v49 = vcombine.low %v407_v36, %v431_v37  ;;  %v503_v54 = vld [vmem:[%s4781_s22 + $0x820] sm:$0xff]  ;;  %v4133_v2 = vcombine.low %v455_v45, %v479_v46  ;;  %v266_v36 = vld [vmem:[%s4781_s22 + $0xb8] sm:$0xff] }
 0x188   : > { %v3573_v9 = vrot.slane %v3565_v62, %v5133_v19  ;;  %3265 = vmatpush1.bf16.msra.mxu0 %v4177_v52  ;;  %v3580_v10 = vrot.slane %v3566_v6, %v5133_v19  ;;  %3306 = vmatpush1.bf16.msra.mxu1 %v4179_v56  ;;  %v5232_v51 = vld [vmem:[%s5105_s28 + $0x8] sm:$0xff]  ;;  %v4087_v52 = vcombine.low %v408_v38, %v432_v39  ;;  %v527_v55 = vld [vmem:[%s4781_s22 + $0x8e0] sm:$0xff] }
 0x189   : > { %4273 = vmatprep.subr.msk.bf16.mxu0 %vm2371_vm0, %v4226_v59  ;;  %4275 = vmatprep.subr.msk.bf16.mxu1 %vm2371_vm0, %v4228_v1  ;;  %v4134_v56 = vcombine.high %v455_v45, %v479_v46  ;;  %v4136_v53 = vcombine.high %v456_v47, %v480_v48  ;;  %v602_v59 = vrot.slane %v5232_v51, %v5101_v50  ;;  %v528_v62 = vld [vmem:[%s4781_s22 + $0x8e8] sm:$0xff]  ;;  %v290_v37 = vld [vmem:[%s4781_s22 + $0x178] sm:$0xff]  ;;  %v313_v45 = vld [vmem:[%s4781_s22 + $0x230] sm:$0xff] }
 0x18a   : > { %v3581_v17 = vcombine.low %v3573_v9, %v3580_v10  ;;  %v610_v63 = vrot.slane %v5232_v51, %v5111_v57  ;;  %v606_v1 = vrot.slane %v5232_v51, %v5114_v58  ;;  %v614_v4 = vrot.slane %v5232_v51, %v5117_v60  ;;  %v551_v9 = vld [vmem:[%s4781_s22 + $0x9a0] sm:$0x33]  ;;  %v337_v46 = vld [vmem:[%s4781_s22 + $0x2f0] sm:$0xff] }
 0x18b   : > { %v4135_v5 = vcombine.low %v456_v47, %v480_v48  ;;  %v4182_v6 = vcombine.high %v503_v54, %v527_v55  ;;  %v4184_v8 = vcombine.high %v504_v61, %v528_v62  ;;  %v4181_v20 = vcombine.low %v503_v54, %v527_v55  ;;  %v314_v48 = vld [vmem:[%s4781_s22 + $0x238] sm:$0xff]  ;;  %v361_v55 = vld [vmem:[%s4781_s22 + $0x3b0] sm:$0xff] }
 0x18c   : > { %3267 = vmatpush1.bf16.msra.mxu0 %v2481_v11  ;;  %3765 = vst [vmem:[%s5151_s17 + $0x8] sm:$0xff] %v3581_v17  ;;  %3308 = vmatpush1.bf16.msra.mxu1 %v2487_v13  ;;  %v552_v13 = vld [vmem:[%s4781_s22 + $0x9a8] sm:$0x33]  ;;  %v4183_v21 = vcombine.low %v504_v61, %v528_v62  ;;  %v4229_v29 = vcombine.low %v551_v9, %v551_v9  ;;  %v362_v61 = vld [vmem:[%s4781_s22 + $0x3b8] sm:$0xff] }
 0x18d   : > { %3336 = vmatprep.subr.bf16.mxu0 %v3942_v12  ;;  %3377 = vmatprep.subr.bf16.mxu1 %v3944_v14  ;;  %v4232_v32 = vcombine.high %v552_v13, %v552_v13  ;;  %v386_v62 = vld [vmem:[%s4781_s22 + $0x478] sm:$0xff] }
 0x18f   : > { %4274 = vmatmul.mubr.msk.bf16.vlgmr.msra.gmra.mrb[36].mxu0 %vm2367_vm1, %v4825_v3  ;;  %4276 = vmatmul.mubr.msk.bf16.vlgmr.msra.gmra.mrb[36].mxu1 %vm2367_vm1, %v4825_v3 }
 0x190   : > { %3337 = vmatpush1.bf16.msra.mxu0 %v3941_v22  ;;  %3378 = vmatpush1.bf16.msra.mxu1 %v3943_v25 }
 0x191   : > { %3338 = vmatprep.subr.bf16.mxu0 %v3990_v27  ;;  %3379 = vmatprep.subr.bf16.mxu1 %v3992_v28  ;;  %v4230_v28 = vcombine.high %v551_v9, %v551_v9 }
 0x192   : > { %3368 = vmatprep.mubr.bf16.mxu0 %v4577_v0  ;;  %3409 = vmatprep.mubr.bf16.mxu1 %v4577_v0 }
 0x194   : > { %3339 = vmatpush1.bf16.msra.mxu0 %v3989_v33  ;;  %3380 = vmatpush1.bf16.msra.mxu1 %v3991_v34  ;;  %v4231_v33 = vcombine.low %v552_v13, %v552_v13  ;;  %v265_v34 = vld [vmem:[%s4781_s22 + $0xb0] sm:$0xff] }
 0x195   : > { %3340 = vmatprep.subr.bf16.mxu0 %v4038_v43  ;;  %3381 = vmatprep.subr.bf16.mxu1 %v4040_v35  ;;  %v289_v43 = vld [vmem:[%s4781_s22 + $0x170] sm:$0xff] }
 0x196   : > { %v457_v13 = vld [vmem:[%s4781_s22 + $0x6b0] sm:$0xff] }
 0x198   : > { %3341 = vmatpush1.bf16.msra.mxu0 %v4037_v40  ;;  %3382 = vmatpush1.bf16.msra.mxu1 %v4039_v41  ;;  %v2493_v40 = vsel %vm2371_vm0, %v4229_v29, 0  ;;  %v3946_v41 = vcombine.high %v265_v34, %v289_v43  ;;  %v530_v29 = vld [vmem:[%s4781_s22 + $0x8f8] sm:$0xff] }
 0x199   : > { %3342 = vmatprep.subr.bf16.mxu0 %v4086_v42  ;;  %3383 = vmatprep.subr.bf16.mxu1 %v4088_v44  ;;  %v2499_v42 = vsel %vm2371_vm0, %v4231_v33, 0  ;;  %v3948_v44 = vcombine.high %v266_v36, %v290_v37  ;;  %v630_v33 = vrot.slane %v5232_v51, %v5182_v26 }
 0x19c   : > { %3343 = vmatpush1.bf16.msra.mxu0 %v4085_v49  ;;  %3384 = vmatpush1.bf16.msra.mxu1 %v4087_v52  ;;  %v338_v49 = vld [vmem:[%s4781_s22 + $0x2f8] sm:$0xff]  ;;  %v3945_v52 = vcombine.low %v265_v34, %v289_v43 }
 0x19d   : > { %3344 = vmatprep.subr.bf16.mxu0 %v4134_v56  ;;  %3385 = vmatprep.subr.bf16.mxu1 %v4136_v53  ;;  %v3947_v56 = vcombine.low %v266_v36, %v290_v37  ;;  %v3994_v53 = vcombine.high %v313_v45, %v337_v46  ;;  %v3996_v54 = vcombine.high %v314_v48, %v338_v49  ;;  %v553_v37 = vld [vmem:[%s4781_s22 + $0x9b0] sm:$0x33] }
 0x19e   : > { %v2714_v7 = vpop.f32.mrb[8].mxu0  ;;  %v2755_v11 = vpop.f32.mrb[8].mxu1 }
 0x19f   : > { %v2715_v10 = vadd.f32 %v2714_v7, %v602_v59  ;;  %v2716_v12 = vpop.f32.mrb[9].mxu0  ;;  %v2756_v14 = vadd.f32 %v2755_v11, %v610_v63  ;;  %v2757_v16 = vpop.f32.mrb[9].mxu1  ;;  %v385_v59 = vld [vmem:[%s4781_s22 + $0x470] sm:$0xff]  ;;  %v3993_v63 = vcombine.low %v313_v45, %v337_v46  ;;  %v410_v7 = vld [vmem:[%s4781_s22 + $0x538] sm:$0xff] }
 0x1a0   : > { %v2717_v15 = vadd.f32 %v2716_v12, %v606_v1  ;;  %v2718_v17 = vpop.f32.mrb[10].mxu0  ;;  %3345 = vmatpush1.bf16.msra.mxu0 %v4133_v2  ;;  %v2758_v22 = vadd.f32 %v2757_v16, %v614_v4  ;;  %v2759_v25 = vpop.f32.mrb[10].mxu1  ;;  %3386 = vmatpush1.bf16.msra.mxu1 %v4135_v5  ;;  %v3995_v1 = vcombine.low %v314_v48, %v338_v49  ;;  %v409_v5 = vld [vmem:[%s4781_s22 + $0x530] sm:$0xff]  ;;  %v482_v16 = vld [vmem:[%s4781_s22 + $0x778] sm:$0xff] }
 0x1a1   : > { %v2719_v27 = vpop.f32.mrb[11].mxu0  ;;  %3346 = vmatprep.subr.bf16.mxu0 %v4182_v6  ;;  %v2760_v31 = vpop.f32.mrb[11].mxu1  ;;  %3387 = vmatprep.subr.bf16.mxu1 %v4184_v8  ;;  %v4042_v2 = vcombine.high %v361_v55, %v385_v59  ;;  %v4044_v4 = vcombine.high %v362_v61, %v386_v62  ;;  %v433_v6 = vld [vmem:[%s4781_s22 + $0x5f0] sm:$0xff]  ;;  %v434_v8 = vld [vmem:[%s4781_s22 + $0x5f8] sm:$0xff]  ;;  %v4041_v9 = vcombine.low %v361_v55, %v385_v59 }
 0x1a2   : > { %v3582_v30 = vcombine.low %v2715_v10, %v2717_v15  ;;  %v3583_v35 = vcombine.low %v2756_v14, %v2758_v22  ;;  %v4043_v10 = vcombine.low %v362_v61, %v386_v62  ;;  %v4090_v11 = vcombine.high %v409_v5, %v433_v6  ;;  %v481_v14 = vld [vmem:[%s4781_s22 + $0x770] sm:$0xff]  ;;  %v458_v15 = vld [vmem:[%s4781_s22 + $0x6b8] sm:$0xff] }
 0x1a3   : > { %v4092_v12 = vcombine.high %v410_v7, %v434_v8  ;;  %v4089_v17 = vcombine.low %v409_v5, %v433_v6  ;;  %v505_v22 = vld [vmem:[%s4781_s22 + $0x830] sm:$0xff]  ;;  %v618_v27 = vrot.slane %v5232_v51, %v5171_v18  ;;  %v622_v31 = vrot.slane %v5232_v51, %v5179_v24 }
 0x1a4   : > { %v3590_v38 = vrot.slane %v3582_v30, %v5133_v19  ;;  %3347 = vmatpush1.bf16.msra.mxu0 %v4181_v20  ;;  %v3597_v39 = vrot.slane %v3583_v35, %v5133_v19  ;;  %3388 = vmatpush1.bf16.msra.mxu1 %v4183_v21  ;;  %v4138_v20 = vcombine.high %v457_v13, %v481_v14  ;;  %v529_v25 = vld [vmem:[%s4781_s22 + $0x8f0] sm:$0xff] }
 0x1a5   : > { %4277 = vmatprep.subr.msk.bf16.mxu0 %vm2371_vm0, %v4230_v28  ;;  %4279 = vmatprep.subr.msk.bf16.mxu1 %vm2371_vm0, %v4232_v32  ;;  %v4140_v21 = vcombine.high %v458_v15, %v482_v16  ;;  %v506_v28 = vld [vmem:[%s4781_s22 + $0x838] sm:$0xff]  ;;  %v626_v30 = vrot.slane %v5232_v51, %v5176_v23  ;;  %v4137_v32 = vcombine.low %v457_v13, %v481_v14  ;;  %v557_v6 = vld [vmem:[%s5105_s28 + $0x10] sm:$0xff] }
 0x1a6   : > { %v3598_v47 = vcombine.low %v3590_v38, %v3597_v39  ;;  %v4139_v34 = vcombine.low %v458_v15, %v482_v16  ;;  %v4186_v43 = vcombine.high %v505_v22, %v529_v25  ;;  %v4188_v36 = vcombine.high %v506_v28, %v530_v29 }
 0x1a7   : > { %v4187_v48 = vcombine.low %v506_v28, %v530_v29 }
 0x1a8   : > { %3349 = vmatpush1.bf16.msra.mxu0 %v2493_v40  ;;  %3766 = vst [vmem:[%s5151_s17 + $0x10] sm:$0xff] %v3598_v47  ;;  %3390 = vmatpush1.bf16.msra.mxu1 %v2499_v42  ;;  %v4185_v47 = vcombine.low %v505_v22, %v529_v25 }
 0x1a9   : > { %3418 = vmatprep.subr.bf16.mxu0 %v3946_v41  ;;  %3459 = vmatprep.subr.bf16.mxu1 %v3948_v44  ;;  %v554_v41 = vld [vmem:[%s4781_s22 + $0x9b8] sm:$0x33] }
 0x1aa   : > { %v4236_v59 = vcombine.high %v554_v41, %v554_v41  ;;  %v4235_v61 = vcombine.low %v554_v41, %v554_v41 }
 0x1ab   : > { %4278 = vmatmul.mubr.msk.bf16.vlgmr.msra.gmra.mrb[40].mxu0 %vm2367_vm1, %v4825_v3  ;;  %4280 = vmatmul.mubr.msk.bf16.vlgmr.msra.gmra.mrb[40].mxu1 %vm2367_vm1, %v4825_v3 }
 0x1ac   : > { %3419 = vmatpush1.bf16.msra.mxu0 %v3945_v52  ;;  %3460 = vmatpush1.bf16.msra.mxu1 %v3947_v56  ;;  %v4234_v56 = vcombine.high %v553_v37, %v553_v37 }
 0x1ad   : > { %3420 = vmatprep.subr.bf16.mxu0 %v3994_v53  ;;  %3461 = vmatprep.subr.bf16.mxu1 %v3996_v54  ;;  %v4233_v53 = vcombine.low %v553_v37, %v553_v37 }
 0x1ae   : > { %3450 = vmatprep.mubr.bf16.mxu0 %v4577_v0  ;;  %3491 = vmatprep.mubr.bf16.mxu1 %v4577_v0  ;;  %v4091_v0 = vcombine.low %v410_v7, %v434_v8  ;;  %v634_v7 = vrot.slane %v557_v6, %v5101_v50  ;;  %v642_v8 = vrot.slane %v557_v6, %v5111_v57 }
 0x1b0   : > { %3421 = vmatpush1.bf16.msra.mxu0 %v3993_v63  ;;  %3462 = vmatpush1.bf16.msra.mxu1 %v3995_v1 }
 0x1b1   : > { %3422 = vmatprep.subr.bf16.mxu0 %v4042_v2  ;;  %3463 = vmatprep.subr.bf16.mxu1 %v4044_v4  ;;  %v2505_v2 = vsel %vm2371_vm0, %v4233_v53, 0  ;;  %v2511_v4 = vsel %vm2371_vm0, %v4235_v61, 0 }
 0x1b4   : > { %3423 = vmatpush1.bf16.msra.mxu0 %v4041_v9  ;;  %3464 = vmatpush1.bf16.msra.mxu1 %v4043_v10  ;;  %v638_v9 = vrot.slane %v557_v6, %v5114_v58  ;;  %v646_v10 = vrot.slane %v557_v6, %v5117_v60 }
 0x1b5   : > { %3424 = vmatprep.subr.bf16.mxu0 %v4090_v11  ;;  %3465 = vmatprep.subr.bf16.mxu1 %v4092_v12 }
 0x1b8   : > { %3425 = vmatpush1.bf16.msra.mxu0 %v4089_v17  ;;  %3466 = vmatpush1.bf16.msra.mxu1 %v4091_v0 }
 0x1b9   : > { %3426 = vmatprep.subr.bf16.mxu0 %v4138_v20  ;;  %3467 = vmatprep.subr.bf16.mxu1 %v4140_v21 }
 0x1ba   : > { %v2796_v35 = vpop.f32.mrb[12].mxu0  ;;  %v2837_v39 = vpop.f32.mrb[12].mxu1 }
 0x1bb   : > { %v2797_v38 = vadd.f32 %v2796_v35, %v618_v27  ;;  %v2798_v40 = vpop.f32.mrb[13].mxu0  ;;  %v2838_v42 = vadd.f32 %v2837_v39, %v626_v30  ;;  %v2839_v45 = vpop.f32.mrb[13].mxu1 }
 0x1bc   : > { %v2799_v44 = vadd.f32 %v2798_v40, %v622_v31  ;;  %v2800_v46 = vpop.f32.mrb[14].mxu0  ;;  %3427 = vmatpush1.bf16.msra.mxu0 %v4137_v32  ;;  %v2840_v49 = vadd.f32 %v2839_v45, %v630_v33  ;;  %v2841_v51 = vpop.f32.mrb[14].mxu1  ;;  %3468 = vmatpush1.bf16.msra.mxu1 %v4139_v34  ;;  %v650_v31 = vrot.slane %v557_v6, %v5171_v18 }
 0x1bd   : > { %v2801_v52 = vpop.f32.mrb[15].mxu0  ;;  %3428 = vmatprep.subr.bf16.mxu0 %v4186_v43  ;;  %v2842_v55 = vpop.f32.mrb[15].mxu1  ;;  %3469 = vmatprep.subr.bf16.mxu1 %v4188_v36  ;;  %v658_v32 = vrot.slane %v557_v6, %v5176_v23  ;;  %v654_v33 = vrot.slane %v557_v6, %v5179_v24  ;;  %v662_v34 = vrot.slane %v557_v6, %v5182_v26 }
 0x1be   : > { %v3599_v54 = vcombine.low %v2797_v38, %v2799_v44  ;;  %v3600_v62 = vcombine.low %v2838_v42, %v2840_v49 }
 0x1c0   : > { %v3607_v63 = vrot.slane %v3599_v54, %v5133_v19  ;;  %3429 = vmatpush1.bf16.msra.mxu0 %v4185_v47  ;;  %v3614_v1 = vrot.slane %v3600_v62, %v5133_v19  ;;  %3470 = vmatpush1.bf16.msra.mxu1 %v4187_v48 }
 0x1c1   : > { %4281 = vmatprep.subr.msk.bf16.mxu0 %vm2371_vm0, %v4234_v56  ;;  %4283 = vmatprep.subr.msk.bf16.mxu1 %vm2371_vm0, %v4236_v59  ;;  %v558_v56 = vld [vmem:[%s5105_s28 + $0x18] sm:$0xff] }
 0x1c2   : > { %v3615_v5 = vcombine.low %v3607_v63, %v3614_v1  ;;  %v666_v53 = vrot.slane %v558_v56, %v5101_v50  ;;  %v674_v54 = vrot.slane %v558_v56, %v5111_v57  ;;  %v670_v55 = vrot.slane %v558_v56, %v5114_v58 }
 0x1c3   : > { %v678_v59 = vrot.slane %v558_v56, %v5117_v60 }
 0x1c4   : > { %3431 = vmatpush1.bf16.msra.mxu0 %v2505_v2  ;;  %3767 = vst [vmem:[%s5151_s17 + $0x18] sm:$0xff] %v3615_v5  ;;  %3472 = vmatpush1.bf16.msra.mxu1 %v2511_v4 }
 0x1c7   : > { %4282 = vmatmul.mubr.msk.bf16.vlgmr.msra.gmra.mrb[44].mxu0 %vm2367_vm1, %v4825_v3  ;;  %4284 = vmatmul.mubr.msk.bf16.vlgmr.msra.gmra.mrb[44].mxu1 %vm2367_vm1, %v4825_v3 }
 0x1d6   : > { %v2878_v11 = vpop.f32.mrb[16].mxu0  ;;  %v2919_v13 = vpop.f32.mrb[16].mxu1 }
 0x1d7   : > { %v2879_v12 = vadd.f32 %v2878_v11, %v634_v7  ;;  %v2880_v14 = vpop.f32.mrb[17].mxu0  ;;  %v2920_v15 = vadd.f32 %v2919_v13, %v642_v8  ;;  %v2921_v17 = vpop.f32.mrb[17].mxu1 }
 0x1d8   : > { %v2881_v16 = vadd.f32 %v2880_v14, %v638_v9  ;;  %v2882_v0 = vpop.f32.mrb[18].mxu0  ;;  %v2922_v20 = vadd.f32 %v2921_v17, %v646_v10  ;;  %v2923_v3 = vpop.f32.mrb[18].mxu1  ;;  %v690_v17 = vrot.slane %v558_v56, %v5176_v23 }
 0x1d9   : > { %v2883_v21 = vpop.f32.mrb[19].mxu0  ;;  %v2924_v25 = vpop.f32.mrb[19].mxu1  ;;  %v686_v0 = vrot.slane %v558_v56, %v5179_v24 }
 0x1da   : > { %v3616_v22 = vcombine.low %v2879_v12, %v2881_v16  ;;  %v3617_v27 = vcombine.low %v2920_v15, %v2922_v20  ;;  %v682_v16 = vrot.slane %v558_v56, %v5171_v18  ;;  %v694_v20 = vrot.slane %v558_v56, %v5182_v26 }
 0x1dc   : > { %v3624_v28 = vrot.slane %v3616_v22, %v5133_v19  ;;  %v3631_v29 = vrot.slane %v3617_v27, %v5133_v19 }
 0x1de   : > { %v3632_v30 = vcombine.low %v3624_v28, %v3631_v29 }
 0x1e0   : > { %3768 = vst [vmem:[%s5151_s17 + $0x20] sm:$0xff] %v3632_v30 }
 0x1f2   : > { %v2960_v43 = vpop.f32.mrb[20].mxu0  ;;  %v3001_v36 = vpop.f32.mrb[20].mxu1 }
 0x1f3   : > { %v2961_v35 = vadd.f32 %v2960_v43, %v650_v31  ;;  %v2962_v37 = vpop.f32.mrb[21].mxu0  ;;  %v3002_v38 = vadd.f32 %v3001_v36, %v658_v32  ;;  %v3003_v40 = vpop.f32.mrb[21].mxu1 }
 0x1f4   : > { %v2963_v39 = vadd.f32 %v2962_v37, %v654_v33  ;;  %v2964_v41 = vpop.f32.mrb[22].mxu0  ;;  %v3004_v42 = vadd.f32 %v3003_v40, %v662_v34  ;;  %v3005_v44 = vpop.f32.mrb[22].mxu1 }
 0x1f5   : > { %v2965_v45 = vpop.f32.mrb[23].mxu0  ;;  %v3006_v47 = vpop.f32.mrb[23].mxu1 }
 0x1f6   : > { %v3633_v46 = vcombine.low %v2961_v35, %v2963_v39  ;;  %v3634_v48 = vcombine.low %v3002_v38, %v3004_v42  ;;  %v559_v39 = vld [vmem:[%s5105_s28 + $0x20] sm:$0xff] }
 0x1f7   : > { %v698_v40 = vrot.slane %v559_v39, %v5101_v50  ;;  %v706_v41 = vrot.slane %v559_v39, %v5111_v57  ;;  %v702_v42 = vrot.slane %v559_v39, %v5114_v58  ;;  %v710_v44 = vrot.slane %v559_v39, %v5117_v60 }
 0x1f8   : > { %v3641_v49 = vrot.slane %v3633_v46, %v5133_v19  ;;  %v3648_v51 = vrot.slane %v3634_v48, %v5133_v19 }
 0x1fa   : > { %v3649_v52 = vcombine.low %v3641_v49, %v3648_v51 }
 0x1fc   : > { %3769 = vst [vmem:[%s5151_s17 + $0x28] sm:$0xff] %v3649_v52 }
 0x20e   : > { %v3042_v61 = vpop.f32.mrb[24].mxu0  ;;  %v3083_v63 = vpop.f32.mrb[24].mxu1 }
 0x20f   : > { %v3043_v62 = vadd.f32 %v3042_v61, %v666_v53  ;;  %v3044_v1 = vpop.f32.mrb[25].mxu0  ;;  %v3084_v2 = vadd.f32 %v3083_v63, %v674_v54  ;;  %v3085_v5 = vpop.f32.mrb[25].mxu1 }
 0x210   : > { %v3045_v4 = vadd.f32 %v3044_v1, %v670_v55  ;;  %v3046_v6 = vpop.f32.mrb[26].mxu0  ;;  %v3086_v7 = vadd.f32 %v3085_v5, %v678_v59  ;;  %v3087_v8 = vpop.f32.mrb[26].mxu1  ;;  %v722_v5 = vrot.slane %v559_v39, %v5176_v23 }
 0x211   : > { %v3047_v9 = vpop.f32.mrb[27].mxu0  ;;  %v3088_v11 = vpop.f32.mrb[27].mxu1  ;;  %v718_v6 = vrot.slane %v559_v39, %v5179_v24 }
 0x212   : > { %v3650_v10 = vcombine.low %v3043_v62, %v3045_v4  ;;  %v3651_v12 = vcombine.low %v3084_v2, %v3086_v7  ;;  %v714_v4 = vrot.slane %v559_v39, %v5171_v18  ;;  %v726_v7 = vrot.slane %v559_v39, %v5182_v26 }
 0x214   : > { %v3658_v13 = vrot.slane %v3650_v10, %v5133_v19  ;;  %v3665_v14 = vrot.slane %v3651_v12, %v5133_v19 }
 0x216   : > { %v3666_v15 = vcombine.low %v3658_v13, %v3665_v14 }
 0x218   : > { %3770 = vst [vmem:[%s5151_s17 + $0x30] sm:$0xff] %v3666_v15 }
 0x22a   : > { %v3124_v3 = vpop.f32.mrb[28].mxu0  ;;  %v3165_v22 = vpop.f32.mrb[28].mxu1 }
 0x22b   : > { %v3125_v21 = vadd.f32 %v3124_v3, %v682_v16  ;;  %v3126_v25 = vpop.f32.mrb[29].mxu0  ;;  %v3166_v27 = vadd.f32 %v3165_v22, %v690_v17  ;;  %v3167_v29 = vpop.f32.mrb[29].mxu1 }
 0x22c   : > { %v3127_v28 = vadd.f32 %v3126_v25, %v686_v0  ;;  %v3128_v30 = vpop.f32.mrb[30].mxu0  ;;  %v3168_v31 = vadd.f32 %v3167_v29, %v694_v20  ;;  %v3169_v32 = vpop.f32.mrb[30].mxu1 }
 0x22d   : > { %v3129_v33 = vpop.f32.mrb[31].mxu0  ;;  %v3170_v43 = vpop.f32.mrb[31].mxu1 }
 0x22e   : > { %v3667_v34 = vcombine.low %v3125_v21, %v3127_v28  ;;  %v3668_v35 = vcombine.low %v3166_v27, %v3168_v31  ;;  %v560_v28 = vld [vmem:[%s5105_s28 + $0x28] sm:$0xff] }
 0x22f   : > { %v730_v29 = vrot.slane %v560_v28, %v5101_v50  ;;  %v738_v30 = vrot.slane %v560_v28, %v5111_v57  ;;  %v734_v31 = vrot.slane %v560_v28, %v5114_v58  ;;  %v742_v32 = vrot.slane %v560_v28, %v5117_v60 }
 0x230   : > { %v3675_v36 = vrot.slane %v3667_v34, %v5133_v19  ;;  %v3682_v37 = vrot.slane %v3668_v35, %v5133_v19 }
 0x232   : > { %v3683_v38 = vcombine.low %v3675_v36, %v3682_v37 }
 0x234   : > { %3771 = vst [vmem:[%s5151_s17 + $0x38] sm:$0xff] %v3683_v38 }
 0x246   : > { %v3206_v45 = vpop.f32.mrb[32].mxu0  ;;  %v3247_v47 = vpop.f32.mrb[32].mxu1 }
 0x247   : > { %v3207_v46 = vadd.f32 %v3206_v45, %v698_v40  ;;  %v3208_v48 = vpop.f32.mrb[33].mxu0  ;;  %v3248_v49 = vadd.f32 %v3247_v47, %v706_v41  ;;  %v3249_v52 = vpop.f32.mrb[33].mxu1  ;;  %v754_v47 = vrot.slane %v560_v28, %v5176_v23 }
 0x248   : > { %v3209_v51 = vadd.f32 %v3208_v48, %v702_v42  ;;  %v3210_v56 = vpop.f32.mrb[34].mxu0  ;;  %v3250_v53 = vadd.f32 %v3249_v52, %v710_v44  ;;  %v3251_v54 = vpop.f32.mrb[34].mxu1  ;;  %v750_v48 = vrot.slane %v560_v28, %v5179_v24 }
 0x249   : > { %v3211_v55 = vpop.f32.mrb[35].mxu0  ;;  %v3252_v61 = vpop.f32.mrb[35].mxu1 }
 0x24a   : > { %v3684_v59 = vcombine.low %v3207_v46, %v3209_v51  ;;  %v3685_v62 = vcombine.low %v3248_v49, %v3250_v53  ;;  %v746_v46 = vrot.slane %v560_v28, %v5171_v18  ;;  %v758_v49 = vrot.slane %v560_v28, %v5182_v26 }
 0x24c   : > { %v3692_v63 = vrot.slane %v3684_v59, %v5133_v19  ;;  %v3699_v1 = vrot.slane %v3685_v62, %v5133_v19 }
 0x24e   : > { %v3700_v2 = vcombine.low %v3692_v63, %v3699_v1 }
 0x250   : > { %3772 = vst [vmem:[%s5151_s17 + $0x40] sm:$0xff] %v3700_v2 }
 0x262   : > { %v3288_v8 = vpop.f32.mrb[36].mxu0  ;;  %v3329_v10 = vpop.f32.mrb[36].mxu1 }
 0x263   : > { %v3289_v9 = vadd.f32 %v3288_v8, %v714_v4  ;;  %v3290_v11 = vpop.f32.mrb[37].mxu0  ;;  %v3330_v12 = vadd.f32 %v3329_v10, %v722_v5  ;;  %v3331_v14 = vpop.f32.mrb[37].mxu1 }
 0x264   : > { %v3291_v13 = vadd.f32 %v3290_v11, %v718_v6  ;;  %v3292_v15 = vpop.f32.mrb[38].mxu0  ;;  %v3332_v16 = vadd.f32 %v3331_v14, %v726_v7  ;;  %v3333_v17 = vpop.f32.mrb[38].mxu1 }
 0x265   : > { %v3293_v0 = vpop.f32.mrb[39].mxu0  ;;  %v3334_v3 = vpop.f32.mrb[39].mxu1 }
 0x266   : > { %v3701_v20 = vcombine.low %v3289_v9, %v3291_v13  ;;  %v3702_v21 = vcombine.low %v3330_v12, %v3332_v16 }
 0x268   : > { %v3709_v22 = vrot.slane %v3701_v20, %v5133_v19  ;;  %v3716_v25 = vrot.slane %v3702_v21, %v5133_v19 }
 0x26a   : > { %v3717_v27 = vcombine.low %v3709_v22, %v3716_v25 }
 0x26c   : > { %3773 = vst [vmem:[%s5151_s17 + $0x48] sm:$0xff] %v3717_v27 }
 0x27e   : > { %v3370_v33 = vpop.f32.mrb[40].mxu0  ;;  %v3411_v43 = vpop.f32.mrb[40].mxu1 }
 0x27f   : > { %v3371_v34 = vadd.f32 %v3370_v33, %v730_v29  ;;  %v3372_v35 = vpop.f32.mrb[41].mxu0  ;;  %v3412_v36 = vadd.f32 %v3411_v43, %v738_v30  ;;  %v3413_v38 = vpop.f32.mrb[41].mxu1 }
 0x280   : > { %v3373_v37 = vadd.f32 %v3372_v35, %v734_v31  ;;  %v3374_v39 = vpop.f32.mrb[42].mxu0  ;;  %v3414_v40 = vadd.f32 %v3413_v38, %v742_v32  ;;  %v3415_v41 = vpop.f32.mrb[42].mxu1 }
 0x281   : > { %v3375_v42 = vpop.f32.mrb[43].mxu0  ;;  %v3416_v50 = vpop.f32.mrb[43].mxu1 }
 0x282   : > { %v3718_v44 = vcombine.low %v3371_v34, %v3373_v37  ;;  %v3719_v45 = vcombine.low %v3412_v36, %v3414_v40 }
 0x284   : > { %v3726_v57 = vrot.slane %v3718_v44, %v5133_v19  ;;  %v3733_v58 = vrot.slane %v3719_v45, %v5133_v19 }
 0x286   : > { %v3734_v60 = vcombine.low %v3726_v57, %v3733_v58 }
 0x288   : > { %3774 = vst [vmem:[%s5151_s17 + $0x50] sm:$0xff] %v3734_v60 }
 0x29a   : > { %v3452_v51 = vpop.f32.mrb[44].mxu0  ;;  %v3493_v56 = vpop.f32.mrb[44].mxu1 }
 0x29b   : > { %v3453_v52 = vadd.f32 %v3452_v51, %v746_v46  ;;  %v3454_v53 = vpop.f32.mrb[45].mxu0  ;;  %v3494_v54 = vadd.f32 %v3493_v56, %v754_v47  ;;  %v3495_v59 = vpop.f32.mrb[45].mxu1 }
 0x29c   : > { %v3455_v55 = vadd.f32 %v3454_v53, %v750_v48  ;;  %v3456_v61 = vpop.f32.mrb[46].mxu0  ;;  %v3496_v62 = vadd.f32 %v3495_v59, %v758_v49  ;;  %v3497_v18 = vpop.f32.mrb[46].mxu1 }
 0x29d   : > { %v3457_v23 = vpop.f32.mrb[47].mxu0  ;;  %v3498_v24 = vpop.f32.mrb[47].mxu1 }
 0x29e   : > { %v3735_v63 = vcombine.low %v3453_v52, %v3455_v55  ;;  %v3736_v1 = vcombine.low %v3494_v54, %v3496_v62 }
 0x2a0   : > { %v3743_v26 = vrot.slane %v3735_v63, %v5133_v19  ;;  %v3750_v2 = vrot.slane %v3736_v1, %v5133_v19 }
 0x2a2   : > { %v3751_v4 = vcombine.low %v3743_v26, %v3750_v2 }
 0x2a4   : > { %3775 = vst [vmem:[%s5151_s17 + $0x58] sm:$0xff] %v3751_v4 }
 0x2a5   : > { %4512 = shalt.err (!%p4509_p1)
}
 0x2a6   : > { %s4513_s8 = scalar_lea.hbm %s5370_s5, 1536  ;;  %s4517_s21 = scalar_lea.hbm %s5418_s3, 3072 }
 0x2a7   : > { %p4514_p6 = scmp.ne.s32.totalorder %s5370_s5, %s4513_s8  ;;  %p4518_p7 = scmp.lt.u32.totalorder %s5370_s5, %s5418_s3 }
 0x2a8   : > { %p4519_p9 = scmp.lt.u32.totalorder %s4517_s21, %s4513_s8  ;;  %p4521_p12 = scmp.lt.u32.totalorder %s4513_s8, %s5370_s5 }
 0x2a9   : > { %p4515_p5 = pnand %p4514_p6, %p5439_p4 }
 0x2aa   : > { %p4520_p10 = por %p4519_p9, %p4518_p7 }
 0x2ab   : > { %p4516_p2 = pneg %p4515_p5 }
 0x2ac   : > { %p4522_p0 = por %p4521_p12, %p4520_p10 }
 0x2ae   : > { %p4523_p11 = pnand %p4522_p0, %p4516_p2 }
 0x2b0   : > { %4526 = shalt.err (!%p4523_p11)
}
 0x2b1   : > { %4304 = dma.vmem_to_hbm [thread:$0]  (%p5439_p4), %s5372_s24, 1536, %s5370_s5, %s3777_s6  }
 0x2b2 PF: > { %s3803_s28 = sand.u32 1, %s4557_s12   ;;  %p5440_p13 = scmp.ne.s32.totalorder %s5429_s29, 0 }
 0x2b3   : > { %p5441_p3 = scmp.ge.s32.totalorder %s4569_s15, 2  ;;  %s3804_s4 = scalar_lea.sflag [#allocation4], %s3803_s28 }
 0x2b5   : > { %p4318_p8 = pnand %p5441_p3, %p5440_p13 }
 0x2b7   : > { %4552 = dma.done.wait (!%p4318_p8), %s3804_s4, 1536  }
 0x2b8   : > { %4554 = vsyncadd (!%p4318_p8), %s3804_s4, 4294965760  ;;  %p17_p1 = scmp.ge.s32.totalorder %s4621_s16, 4   ;;  %s5442_s12 = smov %s4561_s13 }
 0x2b9   : > { %s5443_s13 = smov %s4565_s14  ;;  %s5444_s14 = smov %s4632_s19 }
 0x2ba   : > { %s5445_s15 = smov %s4621_s16  ;;  %19 = sbr.rel (!%p17_p1) target bundleno = 6 (0x6), region = 93 }
 0x2c1   :  { %3809 = vsyncpa [#allocation3], 1 }
 0x2c2   :  { %3811 = vsyncpa [#allocation3 + $0x1], 1 }
 0x2c3   :  { %3812 = vsyncpa [#allocation6], 1 }
 0x2c4   :  { %3814 = vsyncpa [#allocation6 + $0x1], 1 }
 0x2c5   :  { %3815 = vsyncpa [#allocation4], 1 }
 0x2c6   :  { %3817 = vsyncpa [#allocation4 + $0x1], 1 }

</bundles_post_ra>
